<compile_context>
chip_gen: v7x
topology: tpu7x:2x2x1
jax: 0.10.0
libtpu: 0.0.40
codegen_flags: <defaults>
</compile_context>

<pallas_src>
import numpy as np

import jax
import jax.numpy as jnp
from jax.experimental import pallas as pl
from jax.experimental.pallas import tpu as pltpu

KH = KW = 4
STRIDE = 2
PAD = 1
EPS = 1e-5
NEG_SLOPE = 0.2
NUM_LAYERS = 5  # 4 x (conv + BN + LeakyReLU) + 1 final conv
LANE = 128


def _round_up(x, m):
    return (x + m - 1) // m * m


# ---------------------------------------------------------------------------
# Host-side (trace-time) constant builders: shape-only selection matrices.
# ---------------------------------------------------------------------------

def _col_selector(w_in, w_out):
    """(4, Wo, W) 0/1 tensor; csel[kw, oj, j] = 1 iff j == 2*oj + kw - 1 (in bounds)."""
    sel = np.zeros((KW, w_out, w_in), np.float32)
    for kw in range(KW):
        for oj in range(w_out):
            j = STRIDE * oj + kw - PAD
            if 0 <= j < w_in:
                sel[kw, oj, j] = 1.0
    return sel


def _chan_unpack(w_out, cout):
    """(Wo*Co, Co) matrix folding the oj blocks onto the channel axis."""
    t = np.zeros((w_out * cout, cout), np.float32)
    for oj in range(w_out):
        t[oj * cout:(oj + 1) * cout, :] = np.eye(cout, dtype=np.float32)
    return t


# ---------------------------------------------------------------------------
# Fused kernel (all shape metadata is static, closed over).
# ---------------------------------------------------------------------------

def _make_fused_kernel(n_batch, cfgs):
    n_layers = len(cfgs)
    n_bn = n_layers - 1

    def kernel(*refs):
        q_refs = refs[1:1 + n_layers]
        t_refs = refs[1 + n_layers:1 + n_layers + n_bn]
        tt_refs = refs[1 + n_layers + n_bn:1 + n_layers + 2 * n_bn]
        gb_ref = refs[1 + n_layers + 2 * n_bn]
        out_ref = refs[2 + n_layers + 2 * n_bn]
        scratch = refs[3 + n_layers + 2 * n_bn:]
        act_refs = (refs[0],) + tuple(scratch[:n_bn])      # layer-input activations
        xcat_refs = tuple(scratch[n_bn:n_bn + n_layers])   # concat-K matmul operands

        # Zero init: conv zero-padding rows of the activation scratches and the
        # lane padding of the concat-K scratches must read as exact zeros.
        for a_ref in scratch[:n_bn]:
            a_ref[...] = jnp.zeros(a_ref.shape, a_ref.dtype)
        for li, c in enumerate(cfgs):
            if c["wcpad"] != c["wc"]:
                xcat_refs[li][...] = jnp.zeros(xcat_refs[li].shape,
                                               xcat_refs[li].dtype)

        for li, c in enumerate(cfgs):
            act_ref, xcat_ref = act_refs[li], xcat_refs[li]
            ho, wo, cout = c["ho"], c["wo"], c["cout"]
            wc, wcpad = c["wc"], c["wcpad"]
            rows_pb = c["hin"] + 2                     # per-batch padded row count

            # Gather the 4 kernel-row taps with stride-2 sublane reads and lay
            # them side by side at 128-aligned lane offsets -> single MXU dot.
            for nb in range(n_batch):
                for kh in range(KH):
                    start = nb * rows_pb + kh
                    if ho > 1:
                        tap = act_ref[pl.ds(start, ho, stride=2), :]
                    else:
                        tap = act_ref[pl.ds(start, 1), :]
                    xcat_ref[pl.ds(nb * ho, ho), pl.ds(kh * wcpad, wc)] = tap

            y = jnp.dot(xcat_ref[...].astype(jnp.bfloat16), q_refs[li][...],
                        preferred_element_type=jnp.float32)   # (N*Ho, Wo*Co) f32

            if li < n_bn:
                # BatchNorm2d (training-mode batch stats, biased var, eps=1e-5)
                # + LeakyReLU(0.2).  Conv bias intentionally omitted: BN's mean
                # subtraction cancels it exactly.
                inv_count = 1.0 / float(n_batch * ho * wo)
                s1 = jnp.sum(y, axis=0, keepdims=True)          # (1, Wo*Co)
                s2 = jnp.sum(y * y, axis=0, keepdims=True)      # (1, Wo*Co)
                stats = jnp.dot(jnp.concatenate([s1, s2], axis=0),
                                t_refs[li][...],
                                preferred_element_type=jnp.float32)  # (2, Co)
                mean = stats[0:1, :] * inv_count
                var = stats[1:2, :] * inv_count - mean * mean        # biased
                inv_std = jax.lax.rsqrt(var + EPS)
                gamma = gb_ref[li:li + 1, :cout]
                beta = gb_ref[n_bn + li:n_bn + li + 1, :cout]
                scale_c = gamma * inv_std                            # (1, Co)
                shift_c = beta - mean * scale_c                      # (1, Co)
                sb = jnp.dot(jnp.concatenate([scale_c, shift_c], axis=0),
                             tt_refs[li][...],
                             preferred_element_type=jnp.float32)     # (2, Wo*Co)
                yn = y * sb[0:1, :] + sb[1:2, :]
                yn = jnp.where(yn >= 0, yn, NEG_SLOPE * yn)

                # Store into the next layer's per-batch row-padded scratch; the
                # padding rows stay zero (written once at kernel start).
                nxt = act_refs[li + 1]
                rows_pb_next = ho + 2
                for nb in range(n_batch):
                    nxt[pl.ds(nb * rows_pb_next + 1, ho), :] = \
                        yn[nb * ho:(nb + 1) * ho, :]
            else:
                # Final conv: bias, no BN / activation.  Spatial dims are 1x1,
                # so this is already predictions.view(N, -1).
                out_ref[...] = y + gb_ref[2 * n_bn:2 * n_bn + 1, 0:1]

    return kernel


# ---------------------------------------------------------------------------
# Forward pass
# ---------------------------------------------------------------------------

@jax.jit
def discriminator_forward(x_nchw, params):
    n, c_in, h, w = x_nchw.shape

    # Static per-layer geometry.
    cfgs = []
    hh, ww = h, w
    for layer in params:
        wgt = layer[0]                                    # (KH, KW, Cin, Cout)
        cin, cout = wgt.shape[2], wgt.shape[3]
        ho = (hh + 2 * PAD - KH) // STRIDE + 1
        wo = (ww + 2 * PAD - KW) // STRIDE + 1
        wc = ww * cin
        cfgs.append(dict(hin=hh, win=ww, cin=cin, cout=cout, ho=ho, wo=wo,
                         wc=wc, wcpad=_round_up(wc, LANE)))
        hh, ww = ho, wo
    assert hh == 1 and ww == 1, "final conv must reduce spatial dims to 1x1"
    n_bn = NUM_LAYERS - 1

    # Input: NCHW -> per-batch row-padded (N*(H+2), W*C) f32 slab
    # (layout A[n*(H+2)+1+i, j*Cin+c] = x[n, i, j, c]; pad rows are zero).
    x_rows = jnp.transpose(x_nchw, (0, 2, 3, 1)).reshape(n, h, w * c_in)
    x_pad = jnp.pad(x_rows, ((0, 0), (1, 1), (0, 0)))
    x_pad = x_pad.reshape(n * (h + 2), w * c_in).astype(jnp.float32)

    # Per-layer concat-K weight slabs: Q[(kh, j, c), (oj, d)] =
    #   sum_kw 1{j == 2*oj + kw - 1} * W[kh, kw, c, d]   (zero rows = padding).
    q_list, t_list, tt_list = [], [], []
    for li, (layer, c) in enumerate(zip(params, cfgs)):
        wgt = layer[0]
        csel = jnp.asarray(_col_selector(c["win"], c["wo"]))
        q = jnp.einsum('koj,hkcd->hjcod', csel, wgt)
        q = q.reshape(KH, c["wc"], c["wo"] * c["cout"])
        if c["wcpad"] != c["wc"]:
            q = jnp.pad(q, ((0, 0), (0, c["wcpad"] - c["wc"]), (0, 0)))
        q_list.append(q.reshape(KH * c["wcpad"],
                                c["wo"] * c["cout"]).astype(jnp.bfloat16))
        if li < n_bn:
            t_np = _chan_unpack(c["wo"], c["cout"])
            t_list.append(jnp.asarray(t_np))
            tt_list.append(jnp.asarray(np.ascontiguousarray(t_np.T)))

    # Pack all per-channel vectors (gammas, betas, final conv bias) into ONE
    # operand: rows 0..3 gamma_l, 4..7 beta_l, row 8 col 0 = final bias.
    cmax = max(c["cout"] for c in cfgs)
    gb = jnp.zeros((2 * n_bn + 1, cmax), jnp.float32)
    for li, layer in enumerate(params[:-1]):
        gb = gb.at[li, :cfgs[li]["cout"]].set(layer[2].reshape(-1))
        gb = gb.at[n_bn + li, :cfgs[li]["cout"]].set(layer[3].reshape(-1))
    gb = gb.at[2 * n_bn, 0].set(params[-1][1].reshape(-1)[0])

    inputs = [x_pad] + q_list + t_list + tt_list + [gb]

    scratch_shapes = (
        # Per-batch row-padded activation scratches for layers 2..5 (f32).
        [pltpu.VMEM((n * (c["hin"] + 2), c["wc"]), jnp.float32) for c in cfgs[1:]]
        # Concat-K matmul operand scratch per layer (f32).
        + [pltpu.VMEM((n * c["ho"], KH * c["wcpad"]), jnp.float32) for c in cfgs]
    )

    flops = sum(2 * n * c["ho"] * (KH * c["wcpad"]) * (c["wo"] * c["cout"])
                for c in cfgs)
    bytes_accessed = sum(int(np.prod(a.shape)) * a.dtype.itemsize for a in inputs)
    bytes_accessed += n * cfgs[-1]["cout"] * 4

    out = pl.pallas_call(
        _make_fused_kernel(n, cfgs),
        out_shape=jax.ShapeDtypeStruct((n, cfgs[-1]["cout"]), jnp.float32),
        in_specs=[pl.BlockSpec(memory_space=pltpu.MemorySpace.VMEM)] * len(inputs),
        out_specs=pl.BlockSpec(memory_space=pltpu.MemorySpace.VMEM),
        scratch_shapes=scratch_shapes,
        compiler_params=pltpu.CompilerParams(vmem_limit_bytes=32 * 1024 * 1024),
        cost_estimate=pl.CostEstimate(flops=int(flops), transcendentals=0,
                                      bytes_accessed=int(bytes_accessed)),
    )(*inputs)
    return out


# ---------------------------------------------------------------------------
# Parameters (PyTorch-default-style init; conv biases of BN layers are kept in
# the param set for faithfulness but are mathematically cancelled by BN).
# ---------------------------------------------------------------------------

def init_params(key, in_channels, hidden_dim):
    chans = [in_channels, hidden_dim, hidden_dim * 2, hidden_dim * 4,
             hidden_dim * 6, 1]
    params = []
    for i in range(NUM_LAYERS):
        cin, cout = chans[i], chans[i + 1]
        key, kw_, kb_ = jax.random.split(key, 3)
        fan_in = cin * KH * KW
        bound = 1.0 / float(np.sqrt(fan_in))
        wgt = jax.random.uniform(kw_, (KH, KW, cin, cout), jnp.float32,
                                 -bound, bound)
        b = jax.random.uniform(kb_, (1, cout), jnp.float32, -bound, bound)
        if i < NUM_LAYERS - 1:
            gamma = jnp.ones((1, cout), jnp.float32)   # BN weight default
            beta = jnp.zeros((1, cout), jnp.float32)   # BN bias default
            params.append((wgt, b, gamma, beta))
        else:
            params.append((wgt, b))
    return params


# ---------------------------------------------------------------------------
# Plain-JAX reference (f32) for a numerical sanity check.
# ---------------------------------------------------------------------------

def _reference_forward(x_nchw, params):
    x = jnp.transpose(x_nchw, (0, 2, 3, 1)).astype(jnp.float32)   # NHWC
    for li, layer in enumerate(params):
        wgt = layer[0]
        y = jax.lax.conv_general_dilated(
            x, wgt, window_strides=(STRIDE, STRIDE),
            padding=((PAD, PAD), (PAD, PAD)),
            dimension_numbers=('NHWC', 'HWIO', 'NHWC'))
        y = y + layer[1].reshape(1, 1, 1, -1)                      # conv bias
        if li < NUM_LAYERS - 1:
            mean = jnp.mean(y, axis=(0, 1, 2), keepdims=True)
            var = jnp.mean((y - mean) ** 2, axis=(0, 1, 2), keepdims=True)
            y = (y - mean) * jax.lax.rsqrt(var + EPS)
            y = y * layer[2].reshape(1, 1, 1, -1) + layer[3].reshape(1, 1, 1, -1)
            y = jnp.where(y >= 0, y, NEG_SLOPE * y)
        x = y
    return x.reshape(x.shape[0], -1)


if __name__ == "__main__":
    key = jax.random.PRNGKey(0)
    kx, kp = jax.random.split(key)

    # Smallest shapes consistent with the 5-block module: each block halves the
    # spatial size, so 32x32 -> 16 -> 8 -> 4 -> 2 -> 1.  Conditional-GAN style
    # input channels (image + class planes) = 4, hidden_dim = 8, batch = 2.
    n, c, h, w = 2, 4, 32, 32
    hidden_dim = 8

    x = jax.random.normal(kx, (n, c, h, w), jnp.float32)
    params = init_params(kp, c, hidden_dim)

    out = discriminator_forward(x, params)
    jax.block_until_ready(out)

    assert out.shape == (n, 1), out.shape
    assert bool(jnp.all(jnp.isfinite(out)))

    # Sanity check vs. plain-JAX reference (kernel uses bf16 matmul inputs,
    # so the tolerance is loose).
    ref = _reference_forward(x, params)
    err = float(jnp.max(jnp.abs(out - ref)))
    assert err < 0.2, f"max abs error vs reference too large: {err}"

    print("KERNEL_OK")
</pallas_src>

<mosaic_0001>
module attributes {stable_mosaic.version = 11 : i64} {
  func.func @kernel(%arg0: memref<68x128xf32, #tpu.memory_space<vmem>>, %arg1: memref<512x128xbf16, #tpu.memory_space<vmem>>, %arg2: memref<512x128xbf16, #tpu.memory_space<vmem>>, %arg3: memref<512x128xbf16, #tpu.memory_space<vmem>>, %arg4: memref<512x96xbf16, #tpu.memory_space<vmem>>, %arg5: memref<512x1xbf16, #tpu.memory_space<vmem>>, %arg6: memref<128x8xf32, #tpu.memory_space<vmem>>, %arg7: memref<128x16xf32, #tpu.memory_space<vmem>>, %arg8: memref<128x32xf32, #tpu.memory_space<vmem>>, %arg9: memref<96x48xf32, #tpu.memory_space<vmem>>, %arg10: memref<8x128xf32, #tpu.memory_space<vmem>>, %arg11: memref<16x128xf32, #tpu.memory_space<vmem>>, %arg12: memref<32x128xf32, #tpu.memory_space<vmem>>, %arg13: memref<48x96xf32, #tpu.memory_space<vmem>>, %arg14: memref<9x48xf32, #tpu.memory_space<vmem>>, %arg15: memref<2x1xf32, #tpu.memory_space<vmem>>, %arg16: memref<36x128xf32, #tpu.memory_space<vmem>>, %arg17: memref<20x128xf32, #tpu.memory_space<vmem>>, %arg18: memref<12x128xf32, #tpu.memory_space<vmem>>, %arg19: memref<8x96xf32, #tpu.memory_space<vmem>>, %arg20: memref<32x512xf32, #tpu.memory_space<vmem>>, %arg21: memref<16x512xf32, #tpu.memory_space<vmem>>, %arg22: memref<8x512xf32, #tpu.memory_space<vmem>>, %arg23: memref<4x512xf32, #tpu.memory_space<vmem>>, %arg24: memref<2x512xf32, #tpu.memory_space<vmem>>) attributes {dimension_semantics = [], scalar_prefetch = 0 : i64, scratch_operands = 9 : i64, tpu.core_type = #tpu.core_type<tc>} {
    %cst = arith.constant 0.000000e+00 : f32
    %0 = vector.broadcast %cst : f32 to vector<36x128xf32>
    %c0 = arith.constant 0 : index
    %c0_0 = arith.constant 0 : index
    %1 = vector.load %arg16[%c0, %c0_0] : memref<36x128xf32, #tpu.memory_space<vmem>>, vector<36x128xf32>
    tpu.vector_store %arg16[%c0, %c0_0], %0 {strides = array<i32>} : memref<36x128xf32, #tpu.memory_space<vmem>>, vector<36x128xf32>,
    %cst_1 = arith.constant 0.000000e+00 : f32
    %2 = vector.broadcast %cst_1 : f32 to vector<20x128xf32>
    %c0_2 = arith.constant 0 : index
    %c0_3 = arith.constant 0 : index
    %3 = vector.load %arg17[%c0_2, %c0_3] : memref<20x128xf32, #tpu.memory_space<vmem>>, vector<20x128xf32>
    tpu.vector_store %arg17[%c0_2, %c0_3], %2 {strides = array<i32>} : memref<20x128xf32, #tpu.memory_space<vmem>>, vector<20x128xf32>,
    %cst_4 = arith.constant 0.000000e+00 : f32
    %4 = vector.broadcast %cst_4 : f32 to vector<12x128xf32>
    %c0_5 = arith.constant 0 : index
    %c0_6 = arith.constant 0 : index
    %5 = vector.load %arg18[%c0_5, %c0_6] : memref<12x128xf32, #tpu.memory_space<vmem>>, vector<12x128xf32>
    tpu.vector_store %arg18[%c0_5, %c0_6], %4 {strides = array<i32>} : memref<12x128xf32, #tpu.memory_space<vmem>>, vector<12x128xf32>,
    %cst_7 = arith.constant 0.000000e+00 : f32
    %6 = vector.broadcast %cst_7 : f32 to vector<8x96xf32>
    %c0_8 = arith.constant 0 : index
    %c0_9 = arith.constant 0 : index
    %7 = vector.load %arg19[%c0_8, %c0_9] : memref<8x96xf32, #tpu.memory_space<vmem>>, vector<8x96xf32>
    tpu.vector_store %arg19[%c0_8, %c0_9], %6 {strides = array<i32>} : memref<8x96xf32, #tpu.memory_space<vmem>>, vector<8x96xf32>,
    %cst_10 = arith.constant 0.000000e+00 : f32
    %8 = vector.broadcast %cst_10 : f32 to vector<2x512xf32>
    %c0_11 = arith.constant 0 : index
    %c0_12 = arith.constant 0 : index
    %9 = vector.load %arg24[%c0_11, %c0_12] : memref<2x512xf32, #tpu.memory_space<vmem>>, vector<2x512xf32>
    tpu.vector_store %arg24[%c0_11, %c0_12], %8 {strides = array<i32>} : memref<2x512xf32, #tpu.memory_space<vmem>>, vector<2x512xf32>,
    %c0_13 = arith.constant 0 : index
    %c0_14 = arith.constant 0 : index
    %10 = tpu.strided_load %arg0[%c0_13, %c0_14] {strides = array<i32: 2, 1>} : memref<68x128xf32, #tpu.memory_space<vmem>>, vector<16x128xf32>
    %c0_15 = arith.constant 0 : index
    %c0_16 = arith.constant 0 : index
    %11 = vector.load %arg20[%c0_15, %c0_16] : memref<32x512xf32, #tpu.memory_space<vmem>>, vector<16x128xf32>
    tpu.vector_store %arg20[%c0_15, %c0_16], %10 {strides = array<i32>} : memref<32x512xf32, #tpu.memory_space<vmem>>, vector<16x128xf32>,
    %c1 = arith.constant 1 : index
    %c0_17 = arith.constant 0 : index
    %12 = tpu.strided_load %arg0[%c1, %c0_17] {strides = array<i32: 2, 1>} : memref<68x128xf32, #tpu.memory_space<vmem>>, vector<16x128xf32>
    %c0_18 = arith.constant 0 : index
    %c128 = arith.constant 128 : index
    %13 = vector.load %arg20[%c0_18, %c128] : memref<32x512xf32, #tpu.memory_space<vmem>>, vector<16x128xf32>
    tpu.vector_store %arg20[%c0_18, %c128], %12 {strides = array<i32>} : memref<32x512xf32, #tpu.memory_space<vmem>>, vector<16x128xf32>,
    %c2 = arith.constant 2 : index
    %c0_19 = arith.constant 0 : index
    %14 = tpu.strided_load %arg0[%c2, %c0_19] {strides = array<i32: 2, 1>} : memref<68x128xf32, #tpu.memory_space<vmem>>, vector<16x128xf32>
    %c0_20 = arith.constant 0 : index
    %c256 = arith.constant 256 : index
    %15 = vector.load %arg20[%c0_20, %c256] : memref<32x512xf32, #tpu.memory_space<vmem>>, vector<16x128xf32>
    tpu.vector_store %arg20[%c0_20, %c256], %14 {strides = array<i32>} : memref<32x512xf32, #tpu.memory_space<vmem>>, vector<16x128xf32>,
    %c3 = arith.constant 3 : index
    %c0_21 = arith.constant 0 : index
    %16 = tpu.strided_load %arg0[%c3, %c0_21] {strides = array<i32: 2, 1>} : memref<68x128xf32, #tpu.memory_space<vmem>>, vector<16x128xf32>
    %c0_22 = arith.constant 0 : index
    %c384 = arith.constant 384 : index
    %17 = vector.load %arg20[%c0_22, %c384] : memref<32x512xf32, #tpu.memory_space<vmem>>, vector<16x128xf32>
    tpu.vector_store %arg20[%c0_22, %c384], %16 {strides = array<i32>} : memref<32x512xf32, #tpu.memory_space<vmem>>, vector<16x128xf32>,
    %c34 = arith.constant 34 : index
    %c0_23 = arith.constant 0 : index
    %18 = tpu.strided_load %arg0[%c34, %c0_23] {strides = array<i32: 2, 1>} : memref<68x128xf32, #tpu.memory_space<vmem>>, vector<16x128xf32>
    %c16 = arith.constant 16 : index
    %c0_24 = arith.constant 0 : index
    %19 = vector.load %arg20[%c16, %c0_24] : memref<32x512xf32, #tpu.memory_space<vmem>>, vector<16x128xf32>
    tpu.vector_store %arg20[%c16, %c0_24], %18 {strides = array<i32>} : memref<32x512xf32, #tpu.memory_space<vmem>>, vector<16x128xf32>,
    %c35 = arith.constant 35 : index
    %c0_25 = arith.constant 0 : index
    %20 = tpu.strided_load %arg0[%c35, %c0_25] {strides = array<i32: 2, 1>} : memref<68x128xf32, #tpu.memory_space<vmem>>, vector<16x128xf32>
    %c16_26 = arith.constant 16 : index
    %c128_27 = arith.constant 128 : index
    %21 = vector.load %arg20[%c16_26, %c128_27] : memref<32x512xf32, #tpu.memory_space<vmem>>, vector<16x128xf32>
    tpu.vector_store %arg20[%c16_26, %c128_27], %20 {strides = array<i32>} : memref<32x512xf32, #tpu.memory_space<vmem>>, vector<16x128xf32>,
    %c36 = arith.constant 36 : index
    %c0_28 = arith.constant 0 : index
    %22 = tpu.strided_load %arg0[%c36, %c0_28] {strides = array<i32: 2, 1>} : memref<68x128xf32, #tpu.memory_space<vmem>>, vector<16x128xf32>
    %c16_29 = arith.constant 16 : index
    %c256_30 = arith.constant 256 : index
    %23 = vector.load %arg20[%c16_29, %c256_30] : memref<32x512xf32, #tpu.memory_space<vmem>>, vector<16x128xf32>
    tpu.vector_store %arg20[%c16_29, %c256_30], %22 {strides = array<i32>} : memref<32x512xf32, #tpu.memory_space<vmem>>, vector<16x128xf32>,
    %c37 = arith.constant 37 : index
    %c0_31 = arith.constant 0 : index
    %24 = tpu.strided_load %arg0[%c37, %c0_31] {strides = array<i32: 2, 1>} : memref<68x128xf32, #tpu.memory_space<vmem>>, vector<16x128xf32>
    %c16_32 = arith.constant 16 : index
    %c384_33 = arith.constant 384 : index
    %25 = vector.load %arg20[%c16_32, %c384_33] : memref<32x512xf32, #tpu.memory_space<vmem>>, vector<16x128xf32>
    tpu.vector_store %arg20[%c16_32, %c384_33], %24 {strides = array<i32>} : memref<32x512xf32, #tpu.memory_space<vmem>>, vector<16x128xf32>,
    %c0_34 = arith.constant 0 : index
    %c0_35 = arith.constant 0 : index
    %26 = vector.load %arg20[%c0_34, %c0_35] : memref<32x512xf32, #tpu.memory_space<vmem>>, vector<32x512xf32>
    %27 = arith.truncf %26 : vector<32x512xf32> to vector<32x512xbf16>
    %c0_36 = arith.constant 0 : index
    %c0_37 = arith.constant 0 : index
    %28 = vector.load %arg1[%c0_36, %c0_37] : memref<512x128xbf16, #tpu.memory_space<vmem>>, vector<512x128xbf16>
    %cst_38 = arith.constant dense<0.000000e+00> : vector<32x128xf32>
    %29 = tpu.matmul %27, %28, %cst_38 {dimension_numbers = #tpu.dot_dimension_numbers<[1], [0], [0], [1], [0, 0, 1, 1], [], []>} : vector<32x512xbf16>, vector<512x128xbf16>, vector<32x128xf32> -> vector<32x128xf32>
    %cst_39 = arith.constant dense<0.000000e+00> : vector<128xf32>
    %30 = vector.multi_reduction <add>, %29, %cst_39 [0] : vector<32x128xf32> to vector<128xf32>
    %31 = vector.shape_cast %30 : vector<128xf32> to vector<1x128xf32>
    %32 = arith.mulf %29, %29 : vector<32x128xf32>
    %cst_40 = arith.constant dense<0.000000e+00> : vector<128xf32>
    %33 = vector.multi_reduction <add>, %32, %cst_40 [0] : vector<32x128xf32> to vector<128xf32>
    %34 = vector.shape_cast %33 : vector<128xf32> to vector<1x128xf32>
    %35 = tpu.concatenate %31, %34 in 0 : vector<1x128xf32>, vector<1x128xf32> -> vector<2x128xf32>
    %c0_41 = arith.constant 0 : index
    %c0_42 = arith.constant 0 : index
    %36 = vector.load %arg6[%c0_41, %c0_42] : memref<128x8xf32, #tpu.memory_space<vmem>>, vector<128x8xf32>
    %cst_43 = arith.constant dense<0.000000e+00> : vector<2x8xf32>
    %37 = tpu.matmul %35, %36, %cst_43 {dimension_numbers = #tpu.dot_dimension_numbers<[1], [0], [0], [1], [0, 0, 1, 1], [], []>} : vector<2x128xf32>, vector<128x8xf32>, vector<2x8xf32> -> vector<2x8xf32>
    %38 = vector.extract_strided_slice %37 {offsets = [0, 0], sizes = [1, 8], strides = [1, 1]} : vector<2x8xf32> to vector<1x8xf32>
    %cst_44 = arith.constant 0.001953125 : f32
    %39 = vector.broadcast %cst_44 : f32 to vector<1x8xf32>
    %40 = arith.mulf %38, %39 : vector<1x8xf32>
    %41 = vector.extract_strided_slice %37 {offsets = [1, 0], sizes = [1, 8], strides = [1, 1]} : vector<2x8xf32> to vector<1x8xf32>
    %cst_45 = arith.constant 0.001953125 : f32
    %42 = vector.broadcast %cst_45 : f32 to vector<1x8xf32>
    %43 = arith.mulf %41, %42 : vector<1x8xf32>
    %44 = arith.mulf %40, %40 : vector<1x8xf32>
    %45 = arith.subf %43, %44 : vector<1x8xf32>
    %cst_46 = arith.constant 9.99999974E-6 : f32
    %46 = vector.broadcast %cst_46 : f32 to vector<1x8xf32>
    %47 = arith.addf %45, %46 : vector<1x8xf32>
    %48 = math.rsqrt %47 : vector<1x8xf32>
    %c0_47 = arith.constant 0 : index
    %c0_48 = arith.constant 0 : index
    %49 = vector.load %arg14[%c0_47, %c0_48] : memref<9x48xf32, #tpu.memory_space<vmem>>, vector<1x8xf32>
    %c4 = arith.constant 4 : index
    %c0_49 = arith.constant 0 : index
    %50 = vector.load %arg14[%c4, %c0_49] : memref<9x48xf32, #tpu.memory_space<vmem>>, vector<1x8xf32>
    %51 = arith.mulf %49, %48 : vector<1x8xf32>
    %52 = arith.mulf %40, %51 : vector<1x8xf32>
    %53 = arith.subf %50, %52 : vector<1x8xf32>
    %54 = tpu.concatenate %51, %53 in 0 : vector<1x8xf32>, vector<1x8xf32> -> vector<2x8xf32>
    %c0_50 = arith.constant 0 : index
    %c0_51 = arith.constant 0 : index
    %55 = vector.load %arg10[%c0_50, %c0_51] : memref<8x128xf32, #tpu.memory_space<vmem>>, vector<8x128xf32>
    %cst_52 = arith.constant dense<0.000000e+00> : vector<2x128xf32>
    %56 = tpu.matmul %54, %55, %cst_52 {dimension_numbers = #tpu.dot_dimension_numbers<[1], [0], [0], [1], [0, 0, 1, 1], [], []>} : vector<2x8xf32>, vector<8x128xf32>, vector<2x128xf32> -> vector<2x128xf32>
    %57 = vector.extract_strided_slice %56 {offsets = [0, 0], sizes = [1, 128], strides = [1, 1]} : vector<2x128xf32> to vector<1x128xf32>
    %58 = vector.broadcast %57 : vector<1x128xf32> to vector<32x128xf32>
    %59 = arith.mulf %29, %58 : vector<32x128xf32>
    %60 = vector.extract_strided_slice %56 {offsets = [1, 0], sizes = [1, 128], strides = [1, 1]} : vector<2x128xf32> to vector<1x128xf32>
    %61 = vector.broadcast %60 : vector<1x128xf32> to vector<32x128xf32>
    %62 = arith.addf %59, %61 : vector<32x128xf32>
    %cst_53 = arith.constant 0.000000e+00 : f32
    %63 = vector.broadcast %cst_53 : f32 to vector<32x128xf32>
    %64 = arith.cmpf oge, %62, %63 : vector<32x128xf32>
    %cst_54 = arith.constant 2.000000e-01 : f32
    %65 = vector.broadcast %cst_54 : f32 to vector<32x128xf32>
    %66 = arith.mulf %65, %62 : vector<32x128xf32>
    %67 = arith.select %64, %62, %66 : vector<32x128xi1>, vector<32x128xf32>
    %68 = vector.extract_strided_slice %67 {offsets = [0, 0], sizes = [16, 128], strides = [1, 1]} : vector<32x128xf32> to vector<16x128xf32>
    %c1_55 = arith.constant 1 : index
    %c0_56 = arith.constant 0 : index
    %69 = vector.load %arg16[%c1_55, %c0_56] : memref<36x128xf32, #tpu.memory_space<vmem>>, vector<16x128xf32>
    tpu.vector_store %arg16[%c1_55, %c0_56], %68 {strides = array<i32>} : memref<36x128xf32, #tpu.memory_space<vmem>>, vector<16x128xf32>,
    %70 = vector.extract_strided_slice %67 {offsets = [16, 0], sizes = [16, 128], strides = [1, 1]} : vector<32x128xf32> to vector<16x128xf32>
    %c19 = arith.constant 19 : index
    %c0_57 = arith.constant 0 : index
    %71 = vector.load %arg16[%c19, %c0_57] : memref<36x128xf32, #tpu.memory_space<vmem>>, vector<16x128xf32>
    tpu.vector_store %arg16[%c19, %c0_57], %70 {strides = array<i32>} : memref<36x128xf32, #tpu.memory_space<vmem>>, vector<16x128xf32>,
    %c0_58 = arith.constant 0 : index
    %c0_59 = arith.constant 0 : index
    %72 = tpu.strided_load %arg16[%c0_58, %c0_59] {strides = array<i32: 2, 1>} : memref<36x128xf32, #tpu.memory_space<vmem>>, vector<8x128xf32>
    %c0_60 = arith.constant 0 : index
    %c0_61 = arith.constant 0 : index
    %73 = vector.load %arg21[%c0_60, %c0_61] : memref<16x512xf32, #tpu.memory_space<vmem>>, vector<8x128xf32>
    tpu.vector_store %arg21[%c0_60, %c0_61], %72 {strides = array<i32>} : memref<16x512xf32, #tpu.memory_space<vmem>>, vector<8x128xf32>,
    %c1_62 = arith.constant 1 : index
    %c0_63 = arith.constant 0 : index
    %74 = tpu.strided_load %arg16[%c1_62, %c0_63] {strides = array<i32: 2, 1>} : memref<36x128xf32, #tpu.memory_space<vmem>>, vector<8x128xf32>
    %c0_64 = arith.constant 0 : index
    %c128_65 = arith.constant 128 : index
    %75 = vector.load %arg21[%c0_64, %c128_65] : memref<16x512xf32, #tpu.memory_space<vmem>>, vector<8x128xf32>
    tpu.vector_store %arg21[%c0_64, %c128_65], %74 {strides = array<i32>} : memref<16x512xf32, #tpu.memory_space<vmem>>, vector<8x128xf32>,
    %c2_66 = arith.constant 2 : index
    %c0_67 = arith.constant 0 : index
    %76 = tpu.strided_load %arg16[%c2_66, %c0_67] {strides = array<i32: 2, 1>} : memref<36x128xf32, #tpu.memory_space<vmem>>, vector<8x128xf32>
    %c0_68 = arith.constant 0 : index
    %c256_69 = arith.constant 256 : index
    %77 = vector.load %arg21[%c0_68, %c256_69] : memref<16x512xf32, #tpu.memory_space<vmem>>, vector<8x128xf32>
    tpu.vector_store %arg21[%c0_68, %c256_69], %76 {strides = array<i32>} : memref<16x512xf32, #tpu.memory_space<vmem>>, vector<8x128xf32>,
    %c3_70 = arith.constant 3 : index
    %c0_71 = arith.constant 0 : index
    %78 = tpu.strided_load %arg16[%c3_70, %c0_71] {strides = array<i32: 2, 1>} : memref<36x128xf32, #tpu.memory_space<vmem>>, vector<8x128xf32>
    %c0_72 = arith.constant 0 : index
    %c384_73 = arith.constant 384 : index
    %79 = vector.load %arg21[%c0_72, %c384_73] : memref<16x512xf32, #tpu.memory_space<vmem>>, vector<8x128xf32>
    tpu.vector_store %arg21[%c0_72, %c384_73], %78 {strides = array<i32>} : memref<16x512xf32, #tpu.memory_space<vmem>>, vector<8x128xf32>,
    %c18 = arith.constant 18 : index
    %c0_74 = arith.constant 0 : index
    %80 = tpu.strided_load %arg16[%c18, %c0_74] {strides = array<i32: 2, 1>} : memref<36x128xf32, #tpu.memory_space<vmem>>, vector<8x128xf32>
    %c8 = arith.constant 8 : index
    %c0_75 = arith.constant 0 : index
    %81 = vector.load %arg21[%c8, %c0_75] : memref<16x512xf32, #tpu.memory_space<vmem>>, vector<8x128xf32>
    tpu.vector_store %arg21[%c8, %c0_75], %80 {strides = array<i32>} : memref<16x512xf32, #tpu.memory_space<vmem>>, vector<8x128xf32>,
    %c19_76 = arith.constant 19 : index
    %c0_77 = arith.constant 0 : index
    %82 = tpu.strided_load %arg16[%c19_76, %c0_77] {strides = array<i32: 2, 1>} : memref<36x128xf32, #tpu.memory_space<vmem>>, vector<8x128xf32>
    %c8_78 = arith.constant 8 : index
    %c128_79 = arith.constant 128 : index
    %83 = vector.load %arg21[%c8_78, %c128_79] : memref<16x512xf32, #tpu.memory_space<vmem>>, vector<8x128xf32>
    tpu.vector_store %arg21[%c8_78, %c128_79], %82 {strides = array<i32>} : memref<16x512xf32, #tpu.memory_space<vmem>>, vector<8x128xf32>,
    %c20 = arith.constant 20 : index
    %c0_80 = arith.constant 0 : index
    %84 = tpu.strided_load %arg16[%c20, %c0_80] {strides = array<i32: 2, 1>} : memref<36x128xf32, #tpu.memory_space<vmem>>, vector<8x128xf32>
    %c8_81 = arith.constant 8 : index
    %c256_82 = arith.constant 256 : index
    %85 = vector.load %arg21[%c8_81, %c256_82] : memref<16x512xf32, #tpu.memory_space<vmem>>, vector<8x128xf32>
    tpu.vector_store %arg21[%c8_81, %c256_82], %84 {strides = array<i32>} : memref<16x512xf32, #tpu.memory_space<vmem>>, vector<8x128xf32>,
    %c21 = arith.constant 21 : index
    %c0_83 = arith.constant 0 : index
    %86 = tpu.strided_load %arg16[%c21, %c0_83] {strides = array<i32: 2, 1>} : memref<36x128xf32, #tpu.memory_space<vmem>>, vector<8x128xf32>
    %c8_84 = arith.constant 8 : index
    %c384_85 = arith.constant 384 : index
    %87 = vector.load %arg21[%c8_84, %c384_85] : memref<16x512xf32, #tpu.memory_space<vmem>>, vector<8x128xf32>
    tpu.vector_store %arg21[%c8_84, %c384_85], %86 {strides = array<i32>} : memref<16x512xf32, #tpu.memory_space<vmem>>, vector<8x128xf32>,
    %c0_86 = arith.constant 0 : index
    %c0_87 = arith.constant 0 : index
    %88 = vector.load %arg21[%c0_86, %c0_87] : memref<16x512xf32, #tpu.memory_space<vmem>>, vector<16x512xf32>
    %89 = arith.truncf %88 : vector<16x512xf32> to vector<16x512xbf16>
    %c0_88 = arith.constant 0 : index
    %c0_89 = arith.constant 0 : index
    %90 = vector.load %arg2[%c0_88, %c0_89] : memref<512x128xbf16, #tpu.memory_space<vmem>>, vector<512x128xbf16>
    %cst_90 = arith.constant dense<0.000000e+00> : vector<16x128xf32>
    %91 = tpu.matmul %89, %90, %cst_90 {dimension_numbers = #tpu.dot_dimension_numbers<[1], [0], [0], [1], [0, 0, 1, 1], [], []>} : vector<16x512xbf16>, vector<512x128xbf16>, vector<16x128xf32> -> vector<16x128xf32>
    %cst_91 = arith.constant dense<0.000000e+00> : vector<128xf32>
    %92 = vector.multi_reduction <add>, %91, %cst_91 [0] : vector<16x128xf32> to vector<128xf32>
    %93 = vector.shape_cast %92 : vector<128xf32> to vector<1x128xf32>
    %94 = arith.mulf %91, %91 : vector<16x128xf32>
    %cst_92 = arith.constant dense<0.000000e+00> : vector<128xf32>
    %95 = vector.multi_reduction <add>, %94, %cst_92 [0] : vector<16x128xf32> to vector<128xf32>
    %96 = vector.shape_cast %95 : vector<128xf32> to vector<1x128xf32>
    %97 = tpu.concatenate %93, %96 in 0 : vector<1x128xf32>, vector<1x128xf32> -> vector<2x128xf32>
    %c0_93 = arith.constant 0 : index
    %c0_94 = arith.constant 0 : index
    %98 = vector.load %arg7[%c0_93, %c0_94] : memref<128x16xf32, #tpu.memory_space<vmem>>, vector<128x16xf32>
    %cst_95 = arith.constant dense<0.000000e+00> : vector<2x16xf32>
    %99 = tpu.matmul %97, %98, %cst_95 {dimension_numbers = #tpu.dot_dimension_numbers<[1], [0], [0], [1], [0, 0, 1, 1], [], []>} : vector<2x128xf32>, vector<128x16xf32>, vector<2x16xf32> -> vector<2x16xf32>
    %100 = vector.extract_strided_slice %99 {offsets = [0, 0], sizes = [1, 16], strides = [1, 1]} : vector<2x16xf32> to vector<1x16xf32>
    %cst_96 = arith.constant 7.812500e-03 : f32
    %101 = vector.broadcast %cst_96 : f32 to vector<1x16xf32>
    %102 = arith.mulf %100, %101 : vector<1x16xf32>
    %103 = vector.extract_strided_slice %99 {offsets = [1, 0], sizes = [1, 16], strides = [1, 1]} : vector<2x16xf32> to vector<1x16xf32>
    %cst_97 = arith.constant 7.812500e-03 : f32
    %104 = vector.broadcast %cst_97 : f32 to vector<1x16xf32>
    %105 = arith.mulf %103, %104 : vector<1x16xf32>
    %106 = arith.mulf %102, %102 : vector<1x16xf32>
    %107 = arith.subf %105, %106 : vector<1x16xf32>
    %cst_98 = arith.constant 9.99999974E-6 : f32
    %108 = vector.broadcast %cst_98 : f32 to vector<1x16xf32>
    %109 = arith.addf %107, %108 : vector<1x16xf32>
    %110 = math.rsqrt %109 : vector<1x16xf32>
    %c1_99 = arith.constant 1 : index
    %c0_100 = arith.constant 0 : index
    %111 = vector.load %arg14[%c1_99, %c0_100] : memref<9x48xf32, #tpu.memory_space<vmem>>, vector<1x16xf32>
    %c5 = arith.constant 5 : index
    %c0_101 = arith.constant 0 : index
    %112 = vector.load %arg14[%c5, %c0_101] : memref<9x48xf32, #tpu.memory_space<vmem>>, vector<1x16xf32>
    %113 = arith.mulf %111, %110 : vector<1x16xf32>
    %114 = arith.mulf %102, %113 : vector<1x16xf32>
    %115 = arith.subf %112, %114 : vector<1x16xf32>
    %116 = tpu.concatenate %113, %115 in 0 : vector<1x16xf32>, vector<1x16xf32> -> vector<2x16xf32>
    %c0_102 = arith.constant 0 : index
    %c0_103 = arith.constant 0 : index
    %117 = vector.load %arg11[%c0_102, %c0_103] : memref<16x128xf32, #tpu.memory_space<vmem>>, vector<16x128xf32>
    %cst_104 = arith.constant dense<0.000000e+00> : vector<2x128xf32>
    %118 = tpu.matmul %116, %117, %cst_104 {dimension_numbers = #tpu.dot_dimension_numbers<[1], [0], [0], [1], [0, 0, 1, 1], [], []>} : vector<2x16xf32>, vector<16x128xf32>, vector<2x128xf32> -> vector<2x128xf32>
    %119 = vector.extract_strided_slice %118 {offsets = [0, 0], sizes = [1, 128], strides = [1, 1]} : vector<2x128xf32> to vector<1x128xf32>
    %120 = vector.broadcast %119 : vector<1x128xf32> to vector<16x128xf32>
    %121 = arith.mulf %91, %120 : vector<16x128xf32>
    %122 = vector.extract_strided_slice %118 {offsets = [1, 0], sizes = [1, 128], strides = [1, 1]} : vector<2x128xf32> to vector<1x128xf32>
    %123 = vector.broadcast %122 : vector<1x128xf32> to vector<16x128xf32>
    %124 = arith.addf %121, %123 : vector<16x128xf32>
    %cst_105 = arith.constant 0.000000e+00 : f32
    %125 = vector.broadcast %cst_105 : f32 to vector<16x128xf32>
    %126 = arith.cmpf oge, %124, %125 : vector<16x128xf32>
    %cst_106 = arith.constant 2.000000e-01 : f32
    %127 = vector.broadcast %cst_106 : f32 to vector<16x128xf32>
    %128 = arith.mulf %127, %124 : vector<16x128xf32>
    %129 = arith.select %126, %124, %128 : vector<16x128xi1>, vector<16x128xf32>
    %130 = vector.extract_strided_slice %129 {offsets = [0, 0], sizes = [8, 128], strides = [1, 1]} : vector<16x128xf32> to vector<8x128xf32>
    %c1_107 = arith.constant 1 : index
    %c0_108 = arith.constant 0 : index
    %131 = vector.load %arg17[%c1_107, %c0_108] : memref<20x128xf32, #tpu.memory_space<vmem>>, vector<8x128xf32>
    tpu.vector_store %arg17[%c1_107, %c0_108], %130 {strides = array<i32>} : memref<20x128xf32, #tpu.memory_space<vmem>>, vector<8x128xf32>,
    %132 = vector.extract_strided_slice %129 {offsets = [8, 0], sizes = [8, 128], strides = [1, 1]} : vector<16x128xf32> to vector<8x128xf32>
    %c11 = arith.constant 11 : index
    %c0_109 = arith.constant 0 : index
    %133 = vector.load %arg17[%c11, %c0_109] : memref<20x128xf32, #tpu.memory_space<vmem>>, vector<8x128xf32>
    tpu.vector_store %arg17[%c11, %c0_109], %132 {strides = array<i32>} : memref<20x128xf32, #tpu.memory_space<vmem>>, vector<8x128xf32>,
    %c0_110 = arith.constant 0 : index
    %c0_111 = arith.constant 0 : index
    %134 = tpu.strided_load %arg17[%c0_110, %c0_111] {strides = array<i32: 2, 1>} : memref<20x128xf32, #tpu.memory_space<vmem>>, vector<4x128xf32>
    %c0_112 = arith.constant 0 : index
    %c0_113 = arith.constant 0 : index
    %135 = vector.load %arg22[%c0_112, %c0_113] : memref<8x512xf32, #tpu.memory_space<vmem>>, vector<4x128xf32>
    tpu.vector_store %arg22[%c0_112, %c0_113], %134 {strides = array<i32>} : memref<8x512xf32, #tpu.memory_space<vmem>>, vector<4x128xf32>,
    %c1_114 = arith.constant 1 : index
    %c0_115 = arith.constant 0 : index
    %136 = tpu.strided_load %arg17[%c1_114, %c0_115] {strides = array<i32: 2, 1>} : memref<20x128xf32, #tpu.memory_space<vmem>>, vector<4x128xf32>
    %c0_116 = arith.constant 0 : index
    %c128_117 = arith.constant 128 : index
    %137 = vector.load %arg22[%c0_116, %c128_117] : memref<8x512xf32, #tpu.memory_space<vmem>>, vector<4x128xf32>
    tpu.vector_store %arg22[%c0_116, %c128_117], %136 {strides = array<i32>} : memref<8x512xf32, #tpu.memory_space<vmem>>, vector<4x128xf32>,
    %c2_118 = arith.constant 2 : index
    %c0_119 = arith.constant 0 : index
    %138 = tpu.strided_load %arg17[%c2_118, %c0_119] {strides = array<i32: 2, 1>} : memref<20x128xf32, #tpu.memory_space<vmem>>, vector<4x128xf32>
    %c0_120 = arith.constant 0 : index
    %c256_121 = arith.constant 256 : index
    %139 = vector.load %arg22[%c0_120, %c256_121] : memref<8x512xf32, #tpu.memory_space<vmem>>, vector<4x128xf32>
    tpu.vector_store %arg22[%c0_120, %c256_121], %138 {strides = array<i32>} : memref<8x512xf32, #tpu.memory_space<vmem>>, vector<4x128xf32>,
    %c3_122 = arith.constant 3 : index
    %c0_123 = arith.constant 0 : index
    %140 = tpu.strided_load %arg17[%c3_122, %c0_123] {strides = array<i32: 2, 1>} : memref<20x128xf32, #tpu.memory_space<vmem>>, vector<4x128xf32>
    %c0_124 = arith.constant 0 : index
    %c384_125 = arith.constant 384 : index
    %141 = vector.load %arg22[%c0_124, %c384_125] : memref<8x512xf32, #tpu.memory_space<vmem>>, vector<4x128xf32>
    tpu.vector_store %arg22[%c0_124, %c384_125], %140 {strides = array<i32>} : memref<8x512xf32, #tpu.memory_space<vmem>>, vector<4x128xf32>,
    %c10 = arith.constant 10 : index
    %c0_126 = arith.constant 0 : index
    %142 = tpu.strided_load %arg17[%c10, %c0_126] {strides = array<i32: 2, 1>} : memref<20x128xf32, #tpu.memory_space<vmem>>, vector<4x128xf32>
    %c4_127 = arith.constant 4 : index
    %c0_128 = arith.constant 0 : index
    %143 = vector.load %arg22[%c4_127, %c0_128] : memref<8x512xf32, #tpu.memory_space<vmem>>, vector<4x128xf32>
    tpu.vector_store %arg22[%c4_127, %c0_128], %142 {strides = array<i32>} : memref<8x512xf32, #tpu.memory_space<vmem>>, vector<4x128xf32>,
    %c11_129 = arith.constant 11 : index
    %c0_130 = arith.constant 0 : index
    %144 = tpu.strided_load %arg17[%c11_129, %c0_130] {strides = array<i32: 2, 1>} : memref<20x128xf32, #tpu.memory_space<vmem>>, vector<4x128xf32>
    %c4_131 = arith.constant 4 : index
    %c128_132 = arith.constant 128 : index
    %145 = vector.load %arg22[%c4_131, %c128_132] : memref<8x512xf32, #tpu.memory_space<vmem>>, vector<4x128xf32>
    tpu.vector_store %arg22[%c4_131, %c128_132], %144 {strides = array<i32>} : memref<8x512xf32, #tpu.memory_space<vmem>>, vector<4x128xf32>,
    %c12 = arith.constant 12 : index
    %c0_133 = arith.constant 0 : index
    %146 = tpu.strided_load %arg17[%c12, %c0_133] {strides = array<i32: 2, 1>} : memref<20x128xf32, #tpu.memory_space<vmem>>, vector<4x128xf32>
    %c4_134 = arith.constant 4 : index
    %c256_135 = arith.constant 256 : index
    %147 = vector.load %arg22[%c4_134, %c256_135] : memref<8x512xf32, #tpu.memory_space<vmem>>, vector<4x128xf32>
    tpu.vector_store %arg22[%c4_134, %c256_135], %146 {strides = array<i32>} : memref<8x512xf32, #tpu.memory_space<vmem>>, vector<4x128xf32>,
    %c13 = arith.constant 13 : index
    %c0_136 = arith.constant 0 : index
    %148 = tpu.strided_load %arg17[%c13, %c0_136] {strides = array<i32: 2, 1>} : memref<20x128xf32, #tpu.memory_space<vmem>>, vector<4x128xf32>
    %c4_137 = arith.constant 4 : index
    %c384_138 = arith.constant 384 : index
    %149 = vector.load %arg22[%c4_137, %c384_138] : memref<8x512xf32, #tpu.memory_space<vmem>>, vector<4x128xf32>
    tpu.vector_store %arg22[%c4_137, %c384_138], %148 {strides = array<i32>} : memref<8x512xf32, #tpu.memory_space<vmem>>, vector<4x128xf32>,
    %c0_139 = arith.constant 0 : index
    %c0_140 = arith.constant 0 : index
    %150 = vector.load %arg22[%c0_139, %c0_140] : memref<8x512xf32, #tpu.memory_space<vmem>>, vector<8x512xf32>
    %151 = arith.truncf %150 : vector<8x512xf32> to vector<8x512xbf16>
    %c0_141 = arith.constant 0 : index
    %c0_142 = arith.constant 0 : index
    %152 = vector.load %arg3[%c0_141, %c0_142] : memref<512x128xbf16, #tpu.memory_space<vmem>>, vector<512x128xbf16>
    %cst_143 = arith.constant dense<0.000000e+00> : vector<8x128xf32>
    %153 = tpu.matmul %151, %152, %cst_143 {dimension_numbers = #tpu.dot_dimension_numbers<[1], [0], [0], [1], [0, 0, 1, 1], [], []>} : vector<8x512xbf16>, vector<512x128xbf16>, vector<8x128xf32> -> vector<8x128xf32>
    %cst_144 = arith.constant dense<0.000000e+00> : vector<128xf32>
    %154 = vector.multi_reduction <add>, %153, %cst_144 [0] : vector<8x128xf32> to vector<128xf32>
    %155 = vector.shape_cast %154 : vector<128xf32> to vector<1x128xf32>
    %156 = arith.mulf %153, %153 : vector<8x128xf32>
    %cst_145 = arith.constant dense<0.000000e+00> : vector<128xf32>
    %157 = vector.multi_reduction <add>, %156, %cst_145 [0] : vector<8x128xf32> to vector<128xf32>
    %158 = vector.shape_cast %157 : vector<128xf32> to vector<1x128xf32>
    %159 = tpu.concatenate %155, %158 in 0 : vector<1x128xf32>, vector<1x128xf32> -> vector<2x128xf32>
    %c0_146 = arith.constant 0 : index
    %c0_147 = arith.constant 0 : index
    %160 = vector.load %arg8[%c0_146, %c0_147] : memref<128x32xf32, #tpu.memory_space<vmem>>, vector<128x32xf32>
    %cst_148 = arith.constant dense<0.000000e+00> : vector<2x32xf32>
    %161 = tpu.matmul %159, %160, %cst_148 {dimension_numbers = #tpu.dot_dimension_numbers<[1], [0], [0], [1], [0, 0, 1, 1], [], []>} : vector<2x128xf32>, vector<128x32xf32>, vector<2x32xf32> -> vector<2x32xf32>
    %162 = vector.extract_strided_slice %161 {offsets = [0, 0], sizes = [1, 32], strides = [1, 1]} : vector<2x32xf32> to vector<1x32xf32>
    %cst_149 = arith.constant 3.125000e-02 : f32
    %163 = vector.broadcast %cst_149 : f32 to vector<1x32xf32>
    %164 = arith.mulf %162, %163 : vector<1x32xf32>
    %165 = vector.extract_strided_slice %161 {offsets = [1, 0], sizes = [1, 32], strides = [1, 1]} : vector<2x32xf32> to vector<1x32xf32>
    %cst_150 = arith.constant 3.125000e-02 : f32
    %166 = vector.broadcast %cst_150 : f32 to vector<1x32xf32>
    %167 = arith.mulf %165, %166 : vector<1x32xf32>
    %168 = arith.mulf %164, %164 : vector<1x32xf32>
    %169 = arith.subf %167, %168 : vector<1x32xf32>
    %cst_151 = arith.constant 9.99999974E-6 : f32
    %170 = vector.broadcast %cst_151 : f32 to vector<1x32xf32>
    %171 = arith.addf %169, %170 : vector<1x32xf32>
    %172 = math.rsqrt %171 : vector<1x32xf32>
    %c2_152 = arith.constant 2 : index
    %c0_153 = arith.constant 0 : index
    %173 = vector.load %arg14[%c2_152, %c0_153] : memref<9x48xf32, #tpu.memory_space<vmem>>, vector<1x32xf32>
    %c6 = arith.constant 6 : index
    %c0_154 = arith.constant 0 : index
    %174 = vector.load %arg14[%c6, %c0_154] : memref<9x48xf32, #tpu.memory_space<vmem>>, vector<1x32xf32>
    %175 = arith.mulf %173, %172 : vector<1x32xf32>
    %176 = arith.mulf %164, %175 : vector<1x32xf32>
    %177 = arith.subf %174, %176 : vector<1x32xf32>
    %178 = tpu.concatenate %175, %177 in 0 : vector<1x32xf32>, vector<1x32xf32> -> vector<2x32xf32>
    %c0_155 = arith.constant 0 : index
    %c0_156 = arith.constant 0 : index
    %179 = vector.load %arg12[%c0_155, %c0_156] : memref<32x128xf32, #tpu.memory_space<vmem>>, vector<32x128xf32>
    %cst_157 = arith.constant dense<0.000000e+00> : vector<2x128xf32>
    %180 = tpu.matmul %178, %179, %cst_157 {dimension_numbers = #tpu.dot_dimension_numbers<[1], [0], [0], [1], [0, 0, 1, 1], [], []>} : vector<2x32xf32>, vector<32x128xf32>, vector<2x128xf32> -> vector<2x128xf32>
    %181 = vector.extract_strided_slice %180 {offsets = [0, 0], sizes = [1, 128], strides = [1, 1]} : vector<2x128xf32> to vector<1x128xf32>
    %182 = vector.broadcast %181 : vector<1x128xf32> to vector<8x128xf32>
    %183 = arith.mulf %153, %182 : vector<8x128xf32>
    %184 = vector.extract_strided_slice %180 {offsets = [1, 0], sizes = [1, 128], strides = [1, 1]} : vector<2x128xf32> to vector<1x128xf32>
    %185 = vector.broadcast %184 : vector<1x128xf32> to vector<8x128xf32>
    %186 = arith.addf %183, %185 : vector<8x128xf32>
    %cst_158 = arith.constant 0.000000e+00 : f32
    %187 = vector.broadcast %cst_158 : f32 to vector<8x128xf32>
    %188 = arith.cmpf oge, %186, %187 : vector<8x128xf32>
    %cst_159 = arith.constant 2.000000e-01 : f32
    %189 = vector.broadcast %cst_159 : f32 to vector<8x128xf32>
    %190 = arith.mulf %189, %186 : vector<8x128xf32>
    %191 = arith.select %188, %186, %190 : vector<8x128xi1>, vector<8x128xf32>
    %192 = vector.extract_strided_slice %191 {offsets = [0, 0], sizes = [4, 128], strides = [1, 1]} : vector<8x128xf32> to vector<4x128xf32>
    %c1_160 = arith.constant 1 : index
    %c0_161 = arith.constant 0 : index
    %193 = vector.load %arg18[%c1_160, %c0_161] : memref<12x128xf32, #tpu.memory_space<vmem>>, vector<4x128xf32>
    tpu.vector_store %arg18[%c1_160, %c0_161], %192 {strides = array<i32>} : memref<12x128xf32, #tpu.memory_space<vmem>>, vector<4x128xf32>,
    %194 = vector.extract_strided_slice %191 {offsets = [4, 0], sizes = [4, 128], strides = [1, 1]} : vector<8x128xf32> to vector<4x128xf32>
    %c7 = arith.constant 7 : index
    %c0_162 = arith.constant 0 : index
    %195 = vector.load %arg18[%c7, %c0_162] : memref<12x128xf32, #tpu.memory_space<vmem>>, vector<4x128xf32>
    tpu.vector_store %arg18[%c7, %c0_162], %194 {strides = array<i32>} : memref<12x128xf32, #tpu.memory_space<vmem>>, vector<4x128xf32>,
    %c0_163 = arith.constant 0 : index
    %c0_164 = arith.constant 0 : index
    %196 = tpu.strided_load %arg18[%c0_163, %c0_164] {strides = array<i32: 2, 1>} : memref<12x128xf32, #tpu.memory_space<vmem>>, vector<2x128xf32>
    %c0_165 = arith.constant 0 : index
    %c0_166 = arith.constant 0 : index
    %197 = vector.load %arg23[%c0_165, %c0_166] : memref<4x512xf32, #tpu.memory_space<vmem>>, vector<2x128xf32>
    tpu.vector_store %arg23[%c0_165, %c0_166], %196 {strides = array<i32>} : memref<4x512xf32, #tpu.memory_space<vmem>>, vector<2x128xf32>,
    %c1_167 = arith.constant 1 : index
    %c0_168 = arith.constant 0 : index
    %198 = tpu.strided_load %arg18[%c1_167, %c0_168] {strides = array<i32: 2, 1>} : memref<12x128xf32, #tpu.memory_space<vmem>>, vector<2x128xf32>
    %c0_169 = arith.constant 0 : index
    %c128_170 = arith.constant 128 : index
    %199 = vector.load %arg23[%c0_169, %c128_170] : memref<4x512xf32, #tpu.memory_space<vmem>>, vector<2x128xf32>
    tpu.vector_store %arg23[%c0_169, %c128_170], %198 {strides = array<i32>} : memref<4x512xf32, #tpu.memory_space<vmem>>, vector<2x128xf32>,
    %c2_171 = arith.constant 2 : index
    %c0_172 = arith.constant 0 : index
    %200 = tpu.strided_load %arg18[%c2_171, %c0_172] {strides = array<i32: 2, 1>} : memref<12x128xf32, #tpu.memory_space<vmem>>, vector<2x128xf32>
    %c0_173 = arith.constant 0 : index
    %c256_174 = arith.constant 256 : index
    %201 = vector.load %arg23[%c0_173, %c256_174] : memref<4x512xf32, #tpu.memory_space<vmem>>, vector<2x128xf32>
    tpu.vector_store %arg23[%c0_173, %c256_174], %200 {strides = array<i32>} : memref<4x512xf32, #tpu.memory_space<vmem>>, vector<2x128xf32>,
    %c3_175 = arith.constant 3 : index
    %c0_176 = arith.constant 0 : index
    %202 = tpu.strided_load %arg18[%c3_175, %c0_176] {strides = array<i32: 2, 1>} : memref<12x128xf32, #tpu.memory_space<vmem>>, vector<2x128xf32>
    %c0_177 = arith.constant 0 : index
    %c384_178 = arith.constant 384 : index
    %203 = vector.load %arg23[%c0_177, %c384_178] : memref<4x512xf32, #tpu.memory_space<vmem>>, vector<2x128xf32>
    tpu.vector_store %arg23[%c0_177, %c384_178], %202 {strides = array<i32>} : memref<4x512xf32, #tpu.memory_space<vmem>>, vector<2x128xf32>,
    %c6_179 = arith.constant 6 : index
    %c0_180 = arith.constant 0 : index
    %204 = tpu.strided_load %arg18[%c6_179, %c0_180] {strides = array<i32: 2, 1>} : memref<12x128xf32, #tpu.memory_space<vmem>>, vector<2x128xf32>
    %c2_181 = arith.constant 2 : index
    %c0_182 = arith.constant 0 : index
    %205 = vector.load %arg23[%c2_181, %c0_182] : memref<4x512xf32, #tpu.memory_space<vmem>>, vector<2x128xf32>
    tpu.vector_store %arg23[%c2_181, %c0_182], %204 {strides = array<i32>} : memref<4x512xf32, #tpu.memory_space<vmem>>, vector<2x128xf32>,
    %c7_183 = arith.constant 7 : index
    %c0_184 = arith.constant 0 : index
    %206 = tpu.strided_load %arg18[%c7_183, %c0_184] {strides = array<i32: 2, 1>} : memref<12x128xf32, #tpu.memory_space<vmem>>, vector<2x128xf32>
    %c2_185 = arith.constant 2 : index
    %c128_186 = arith.constant 128 : index
    %207 = vector.load %arg23[%c2_185, %c128_186] : memref<4x512xf32, #tpu.memory_space<vmem>>, vector<2x128xf32>
    tpu.vector_store %arg23[%c2_185, %c128_186], %206 {strides = array<i32>} : memref<4x512xf32, #tpu.memory_space<vmem>>, vector<2x128xf32>,
    %c8_187 = arith.constant 8 : index
    %c0_188 = arith.constant 0 : index
    %208 = tpu.strided_load %arg18[%c8_187, %c0_188] {strides = array<i32: 2, 1>} : memref<12x128xf32, #tpu.memory_space<vmem>>, vector<2x128xf32>
    %c2_189 = arith.constant 2 : index
    %c256_190 = arith.constant 256 : index
    %209 = vector.load %arg23[%c2_189, %c256_190] : memref<4x512xf32, #tpu.memory_space<vmem>>, vector<2x128xf32>
    tpu.vector_store %arg23[%c2_189, %c256_190], %208 {strides = array<i32>} : memref<4x512xf32, #tpu.memory_space<vmem>>, vector<2x128xf32>,
    %c9 = arith.constant 9 : index
    %c0_191 = arith.constant 0 : index
    %210 = tpu.strided_load %arg18[%c9, %c0_191] {strides = array<i32: 2, 1>} : memref<12x128xf32, #tpu.memory_space<vmem>>, vector<2x128xf32>
    %c2_192 = arith.constant 2 : index
    %c384_193 = arith.constant 384 : index
    %211 = vector.load %arg23[%c2_192, %c384_193] : memref<4x512xf32, #tpu.memory_space<vmem>>, vector<2x128xf32>
    tpu.vector_store %arg23[%c2_192, %c384_193], %210 {strides = array<i32>} : memref<4x512xf32, #tpu.memory_space<vmem>>, vector<2x128xf32>,
    %c0_194 = arith.constant 0 : index
    %c0_195 = arith.constant 0 : index
    %212 = vector.load %arg23[%c0_194, %c0_195] : memref<4x512xf32, #tpu.memory_space<vmem>>, vector<4x512xf32>
    %213 = arith.truncf %212 : vector<4x512xf32> to vector<4x512xbf16>
    %c0_196 = arith.constant 0 : index
    %c0_197 = arith.constant 0 : index
    %214 = vector.load %arg4[%c0_196, %c0_197] : memref<512x96xbf16, #tpu.memory_space<vmem>>, vector<512x96xbf16>
    %cst_198 = arith.constant dense<0.000000e+00> : vector<4x96xf32>
    %215 = tpu.matmul %213, %214, %cst_198 {dimension_numbers = #tpu.dot_dimension_numbers<[1], [0], [0], [1], [0, 0, 1, 1], [], []>} : vector<4x512xbf16>, vector<512x96xbf16>, vector<4x96xf32> -> vector<4x96xf32>
    %cst_199 = arith.constant dense<0.000000e+00> : vector<96xf32>
    %216 = vector.multi_reduction <add>, %215, %cst_199 [0] : vector<4x96xf32> to vector<96xf32>
    %217 = vector.shape_cast %216 : vector<96xf32> to vector<1x96xf32>
    %218 = arith.mulf %215, %215 : vector<4x96xf32>
    %cst_200 = arith.constant dense<0.000000e+00> : vector<96xf32>
    %219 = vector.multi_reduction <add>, %218, %cst_200 [0] : vector<4x96xf32> to vector<96xf32>
    %220 = vector.shape_cast %219 : vector<96xf32> to vector<1x96xf32>
    %221 = tpu.concatenate %217, %220 in 0 : vector<1x96xf32>, vector<1x96xf32> -> vector<2x96xf32>
    %c0_201 = arith.constant 0 : index
    %c0_202 = arith.constant 0 : index
    %222 = vector.load %arg9[%c0_201, %c0_202] : memref<96x48xf32, #tpu.memory_space<vmem>>, vector<96x48xf32>
    %cst_203 = arith.constant dense<0.000000e+00> : vector<2x48xf32>
    %223 = tpu.matmul %221, %222, %cst_203 {dimension_numbers = #tpu.dot_dimension_numbers<[1], [0], [0], [1], [0, 0, 1, 1], [], []>} : vector<2x96xf32>, vector<96x48xf32>, vector<2x48xf32> -> vector<2x48xf32>
    %224 = vector.extract_strided_slice %223 {offsets = [0, 0], sizes = [1, 48], strides = [1, 1]} : vector<2x48xf32> to vector<1x48xf32>
    %cst_204 = arith.constant 1.250000e-01 : f32
    %225 = vector.broadcast %cst_204 : f32 to vector<1x48xf32>
    %226 = arith.mulf %224, %225 : vector<1x48xf32>
    %227 = vector.extract_strided_slice %223 {offsets = [1, 0], sizes = [1, 48], strides = [1, 1]} : vector<2x48xf32> to vector<1x48xf32>
    %cst_205 = arith.constant 1.250000e-01 : f32
    %228 = vector.broadcast %cst_205 : f32 to vector<1x48xf32>
    %229 = arith.mulf %227, %228 : vector<1x48xf32>
    %230 = arith.mulf %226, %226 : vector<1x48xf32>
    %231 = arith.subf %229, %230 : vector<1x48xf32>
    %cst_206 = arith.constant 9.99999974E-6 : f32
    %232 = vector.broadcast %cst_206 : f32 to vector<1x48xf32>
    %233 = arith.addf %231, %232 : vector<1x48xf32>
    %234 = math.rsqrt %233 : vector<1x48xf32>
    %c3_207 = arith.constant 3 : index
    %c0_208 = arith.constant 0 : index
    %235 = vector.load %arg14[%c3_207, %c0_208] : memref<9x48xf32, #tpu.memory_space<vmem>>, vector<1x48xf32>
    %c7_209 = arith.constant 7 : index
    %c0_210 = arith.constant 0 : index
    %236 = vector.load %arg14[%c7_209, %c0_210] : memref<9x48xf32, #tpu.memory_space<vmem>>, vector<1x48xf32>
    %237 = arith.mulf %235, %234 : vector<1x48xf32>
    %238 = arith.mulf %226, %237 : vector<1x48xf32>
    %239 = arith.subf %236, %238 : vector<1x48xf32>
    %240 = tpu.concatenate %237, %239 in 0 : vector<1x48xf32>, vector<1x48xf32> -> vector<2x48xf32>
    %c0_211 = arith.constant 0 : index
    %c0_212 = arith.constant 0 : index
    %241 = vector.load %arg13[%c0_211, %c0_212] : memref<48x96xf32, #tpu.memory_space<vmem>>, vector<48x96xf32>
    %cst_213 = arith.constant dense<0.000000e+00> : vector<2x96xf32>
    %242 = tpu.matmul %240, %241, %cst_213 {dimension_numbers = #tpu.dot_dimension_numbers<[1], [0], [0], [1], [0, 0, 1, 1], [], []>} : vector<2x48xf32>, vector<48x96xf32>, vector<2x96xf32> -> vector<2x96xf32>
    %243 = vector.extract_strided_slice %242 {offsets = [0, 0], sizes = [1, 96], strides = [1, 1]} : vector<2x96xf32> to vector<1x96xf32>
    %244 = vector.broadcast %243 : vector<1x96xf32> to vector<4x96xf32>
    %245 = arith.mulf %215, %244 : vector<4x96xf32>
    %246 = vector.extract_strided_slice %242 {offsets = [1, 0], sizes = [1, 96], strides = [1, 1]} : vector<2x96xf32> to vector<1x96xf32>
    %247 = vector.broadcast %246 : vector<1x96xf32> to vector<4x96xf32>
    %248 = arith.addf %245, %247 : vector<4x96xf32>
    %cst_214 = arith.constant 0.000000e+00 : f32
    %249 = vector.broadcast %cst_214 : f32 to vector<4x96xf32>
    %250 = arith.cmpf oge, %248, %249 : vector<4x96xf32>
    %cst_215 = arith.constant 2.000000e-01 : f32
    %251 = vector.broadcast %cst_215 : f32 to vector<4x96xf32>
    %252 = arith.mulf %251, %248 : vector<4x96xf32>
    %253 = arith.select %250, %248, %252 : vector<4x96xi1>, vector<4x96xf32>
    %254 = vector.extract_strided_slice %253 {offsets = [0, 0], sizes = [2, 96], strides = [1, 1]} : vector<4x96xf32> to vector<2x96xf32>
    %c1_216 = arith.constant 1 : index
    %c0_217 = arith.constant 0 : index
    %255 = vector.load %arg19[%c1_216, %c0_217] : memref<8x96xf32, #tpu.memory_space<vmem>>, vector<2x96xf32>
    tpu.vector_store %arg19[%c1_216, %c0_217], %254 {strides = array<i32>} : memref<8x96xf32, #tpu.memory_space<vmem>>, vector<2x96xf32>,
    %256 = vector.extract_strided_slice %253 {offsets = [2, 0], sizes = [2, 96], strides = [1, 1]} : vector<4x96xf32> to vector<2x96xf32>
    %c5_218 = arith.constant 5 : index
    %c0_219 = arith.constant 0 : index
    %257 = vector.load %arg19[%c5_218, %c0_219] : memref<8x96xf32, #tpu.memory_space<vmem>>, vector<2x96xf32>
    tpu.vector_store %arg19[%c5_218, %c0_219], %256 {strides = array<i32>} : memref<8x96xf32, #tpu.memory_space<vmem>>, vector<2x96xf32>,
    %c0_220 = arith.constant 0 : index
    %c0_221 = arith.constant 0 : index
    %258 = vector.load %arg19[%c0_220, %c0_221] : memref<8x96xf32, #tpu.memory_space<vmem>>, vector<1x96xf32>
    %c0_222 = arith.constant 0 : index
    %c0_223 = arith.constant 0 : index
    %259 = vector.load %arg24[%c0_222, %c0_223] : memref<2x512xf32, #tpu.memory_space<vmem>>, vector<1x96xf32>
    tpu.vector_store %arg24[%c0_222, %c0_223], %258 {strides = array<i32>} : memref<2x512xf32, #tpu.memory_space<vmem>>, vector<1x96xf32>,
    %c1_224 = arith.constant 1 : index
    %c0_225 = arith.constant 0 : index
    %260 = vector.load %arg19[%c1_224, %c0_225] : memref<8x96xf32, #tpu.memory_space<vmem>>, vector<1x96xf32>
    %c0_226 = arith.constant 0 : index
    %c128_227 = arith.constant 128 : index
    %261 = vector.load %arg24[%c0_226, %c128_227] : memref<2x512xf32, #tpu.memory_space<vmem>>, vector<1x96xf32>
    tpu.vector_store %arg24[%c0_226, %c128_227], %260 {strides = array<i32>} : memref<2x512xf32, #tpu.memory_space<vmem>>, vector<1x96xf32>,
    %c2_228 = arith.constant 2 : index
    %c0_229 = arith.constant 0 : index
    %262 = vector.load %arg19[%c2_228, %c0_229] : memref<8x96xf32, #tpu.memory_space<vmem>>, vector<1x96xf32>
    %c0_230 = arith.constant 0 : index
    %c256_231 = arith.constant 256 : index
    %263 = vector.load %arg24[%c0_230, %c256_231] : memref<2x512xf32, #tpu.memory_space<vmem>>, vector<1x96xf32>
    tpu.vector_store %arg24[%c0_230, %c256_231], %262 {strides = array<i32>} : memref<2x512xf32, #tpu.memory_space<vmem>>, vector<1x96xf32>,
    %c3_232 = arith.constant 3 : index
    %c0_233 = arith.constant 0 : index
    %264 = vector.load %arg19[%c3_232, %c0_233] : memref<8x96xf32, #tpu.memory_space<vmem>>, vector<1x96xf32>
    %c0_234 = arith.constant 0 : index
    %c384_235 = arith.constant 384 : index
    %265 = vector.load %arg24[%c0_234, %c384_235] : memref<2x512xf32, #tpu.memory_space<vmem>>, vector<1x96xf32>
    tpu.vector_store %arg24[%c0_234, %c384_235], %264 {strides = array<i32>} : memref<2x512xf32, #tpu.memory_space<vmem>>, vector<1x96xf32>,
    %c4_236 = arith.constant 4 : index
    %c0_237 = arith.constant 0 : index
    %266 = vector.load %arg19[%c4_236, %c0_237] : memref<8x96xf32, #tpu.memory_space<vmem>>, vector<1x96xf32>
    %c1_238 = arith.constant 1 : index
    %c0_239 = arith.constant 0 : index
    %267 = vector.load %arg24[%c1_238, %c0_239] : memref<2x512xf32, #tpu.memory_space<vmem>>, vector<1x96xf32>
    tpu.vector_store %arg24[%c1_238, %c0_239], %266 {strides = array<i32>} : memref<2x512xf32, #tpu.memory_space<vmem>>, vector<1x96xf32>,
    %c5_240 = arith.constant 5 : index
    %c0_241 = arith.constant 0 : index
    %268 = vector.load %arg19[%c5_240, %c0_241] : memref<8x96xf32, #tpu.memory_space<vmem>>, vector<1x96xf32>
    %c1_242 = arith.constant 1 : index
    %c128_243 = arith.constant 128 : index
    %269 = vector.load %arg24[%c1_242, %c128_243] : memref<2x512xf32, #tpu.memory_space<vmem>>, vector<1x96xf32>
    tpu.vector_store %arg24[%c1_242, %c128_243], %268 {strides = array<i32>} : memref<2x512xf32, #tpu.memory_space<vmem>>, vector<1x96xf32>,
    %c6_244 = arith.constant 6 : index
    %c0_245 = arith.constant 0 : index
    %270 = vector.load %arg19[%c6_244, %c0_245] : memref<8x96xf32, #tpu.memory_space<vmem>>, vector<1x96xf32>
    %c1_246 = arith.constant 1 : index
    %c256_247 = arith.constant 256 : index
    %271 = vector.load %arg24[%c1_246, %c256_247] : memref<2x512xf32, #tpu.memory_space<vmem>>, vector<1x96xf32>
    tpu.vector_store %arg24[%c1_246, %c256_247], %270 {strides = array<i32>} : memref<2x512xf32, #tpu.memory_space<vmem>>, vector<1x96xf32>,
    %c7_248 = arith.constant 7 : index
    %c0_249 = arith.constant 0 : index
    %272 = vector.load %arg19[%c7_248, %c0_249] : memref<8x96xf32, #tpu.memory_space<vmem>>, vector<1x96xf32>
    %c1_250 = arith.constant 1 : index
    %c384_251 = arith.constant 384 : index
    %273 = vector.load %arg24[%c1_250, %c384_251] : memref<2x512xf32, #tpu.memory_space<vmem>>, vector<1x96xf32>
    tpu.vector_store %arg24[%c1_250, %c384_251], %272 {strides = array<i32>} : memref<2x512xf32, #tpu.memory_space<vmem>>, vector<1x96xf32>,
    %c0_252 = arith.constant 0 : index
    %c0_253 = arith.constant 0 : index
    %274 = vector.load %arg24[%c0_252, %c0_253] : memref<2x512xf32, #tpu.memory_space<vmem>>, vector<2x512xf32>
    %275 = arith.truncf %274 : vector<2x512xf32> to vector<2x512xbf16>
    %c0_254 = arith.constant 0 : index
    %c0_255 = arith.constant 0 : index
    %276 = vector.load %arg5[%c0_254, %c0_255] : memref<512x1xbf16, #tpu.memory_space<vmem>>, vector<512x1xbf16>
    %cst_256 = arith.constant dense<0.000000e+00> : vector<2x1xf32>
    %277 = tpu.matmul %275, %276, %cst_256 {dimension_numbers = #tpu.dot_dimension_numbers<[1], [0], [0], [1], [0, 0, 1, 1], [], []>} : vector<2x512xbf16>, vector<512x1xbf16>, vector<2x1xf32> -> vector<2x1xf32>
    %c8_257 = arith.constant 8 : index
    %c0_258 = arith.constant 0 : index
    %278 = vector.load %arg14[%c8_257, %c0_258] : memref<9x48xf32, #tpu.memory_space<vmem>>, vector<1x1xf32>
    %279 = vector.broadcast %278 : vector<1x1xf32> to vector<2x1xf32>
    %280 = arith.addf %277, %279 : vector<2x1xf32>
    %c0_259 = arith.constant 0 : index
    %c0_260 = arith.constant 0 : index
    %281 = vector.load %arg15[%c0_259, %c0_260] : memref<2x1xf32, #tpu.memory_space<vmem>>, vector<2x1xf32>
    tpu.vector_store %arg15[%c0_259, %c0_260], %280 {strides = array<i32>} : memref<2x1xf32, #tpu.memory_space<vmem>>, vector<2x1xf32>,
    return
  }
}

</mosaic_0001>

<bundles_post_ra>
// kernel: discriminator_forward.1
= control target key start
LH: loop header
LB: loop body
LE: loop exit
PB: predicated region body
PF: predicated region fallthrough
CT: control target
= control target key end

     0   :  { %v3851_v59 = vmov 0.0|0.0   ;;  %vm3852_vm0 = vmmov 0   ;;  %vm511_vm1 = vcmask 1040384   ;;  %vm620_vm2 = vcmask 64512   ;;  %s4863_s1 = inlined_call_operand.vmem [shape: bf16[512,128], index: 1, kind: input, shape index: {}]   ;;  %s4864_s0 = inlined_call_operand.vmem [shape: f32[68,128], index: 0, kind: input, shape index: {}]   ;;  %s4865_s6 = inlined_call_operand.vmem [shape: f32[128,8], index: 6, kind: input, shape index: {}]   ;;  %s4866_s10 = inlined_call_operand.vmem [shape: f32[8,128], index: 10, kind: input, shape index: {}]   ;;  %s4867_s2 = inlined_call_operand.vmem [shape: bf16[512,128], index: 2, kind: input, shape index: {}]   ;;  %s4868_s14 = inlined_call_operand.vmem [shape: f32[9,48], index: 14, kind: input, shape index: {}]   ;;  %s4869_s7 = inlined_call_operand.vmem [shape: f32[128,16], index: 7, kind: input, shape index: {}]   ;;  %s4870_s11 = inlined_call_operand.vmem [shape: f32[16,128], index: 11, kind: input, shape index: {}]   ;;  %s4871_s3 = inlined_call_operand.vmem [shape: bf16[512,128], index: 3, kind: input, shape index: {}]   ;;  %s4872_s8 = inlined_call_operand.vmem [shape: f32[128,32], index: 8, kind: input, shape index: {}]   ;;  %s4873_s12 = inlined_call_operand.vmem [shape: f32[32,128], index: 12, kind: input, shape index: {}]   ;;  %s4874_s4 = inlined_call_operand.vmem [shape: bf16[512,96], index: 4, kind: input, shape index: {}]   ;;  %s4875_s9 = inlined_call_operand.vmem [shape: f32[96,48], index: 9, kind: input, shape index: {}]   ;;  %s4876_s13 = inlined_call_operand.vmem [shape: f32[48,96], index: 13, kind: input, shape index: {}]   ;;  %s4877_s5 = inlined_call_operand.vmem [shape: bf16[512,1], index: 5, kind: input, shape index: {}]   ;;  %s4878_s15 = inlined_call_operand.vmem [shape: f32[2,1], index: 15, kind: output, shape index: {}]  }
   0x1   :  { %v3679_v0 = vld [vmem:[%s4863_s1 + $0x40] sm:$0xff]   ;;  %v3683_v4 = vld [vmem:[%s4863_s1 + $0x48] sm:$0xff]   ;;  %v3687_v8 = vld [vmem:[%s4863_s1 + $0x50] sm:$0xff]   ;;  %vm1224_vm7 = vcmask 130048   ;;  %vm1821_vm10 = vcmask 261120   ;;  %vm61_vm12 = vcmask 785408  }
   0x2   :  { %v3680_v1 = vld [vmem:[%s4863_s1 + $0xc0] sm:$0xff]   ;;  %3084 = vmatprep.subr.bf16.mxu0 %v3679_v0  ;;  %v3684_v5 = vld [vmem:[%s4863_s1 + $0xc8] sm:$0xff]   ;;  %v3688_v9 = vld [vmem:[%s4863_s1 + $0xd0] sm:$0xff]   ;;  %vm2293_vm13 = vcmask 781312   ;;  %vm2421_vm14 = vcmask 392192   ;;  %vm2513_vm15 = vcmask 778240  }
   0x3   :  { %v3681_v2 = vld [vmem:[%s4863_s1] sm:$0xff]   ;;  %3112 = vmatprep.subr.bf16.mxu1 %v3680_v1  ;;  %v3685_v6 = vld [vmem:[%s4863_s1 + $0x8] sm:$0xff]   ;;  %v3689_v10 = vld [vmem:[%s4863_s1 + $0x10] sm:$0xff]  }
   0x4   :  { %v3682_v3 = vld [vmem:[%s4863_s1 + $0x80] sm:$0xff]   ;;  %3085 = vmatpush3.bf16.msra.mxu0 %v3681_v2  ;;  %v3686_v7 = vld [vmem:[%s4863_s1 + $0x88] sm:$0xff]   ;;  %v3690_v11 = vld [vmem:[%s4863_s1 + $0x90] sm:$0xff]  }
   0x5   :  { %3113 = vmatpush3.bf16.msra.mxu1 %v3682_v3  ;;  %3086 = vmatprep.subr.bf16.mxu0 %v3683_v4  ;;  %v3691_v12 = vld [vmem:[%s4863_s1 + $0x58] sm:$0xff]   ;;  %v3695_v16 = vld [vmem:[%s4863_s1 + $0x60] sm:$0xff]   ;;  %v3699_v20 = vld [vmem:[%s4863_s1 + $0x68] sm:$0xff]  }
   0x6   :  { %3114 = vmatprep.subr.bf16.mxu1 %v3684_v5  ;;  %v3692_v13 = vld [vmem:[%s4863_s1 + $0xd8] sm:$0xff]   ;;  %v3696_v17 = vld [vmem:[%s4863_s1 + $0xe0] sm:$0xff]   ;;  %v3700_v21 = vld [vmem:[%s4863_s1 + $0xe8] sm:$0xff]  }
   0x7   :  { %v3693_v14 = vld [vmem:[%s4863_s1 + $0x18] sm:$0xff]   ;;  %v3697_v18 = vld [vmem:[%s4863_s1 + $0x20] sm:$0xff]   ;;  %v3701_v22 = vld [vmem:[%s4863_s1 + $0x28] sm:$0xff]  }
   0x8   :  { %3087 = vmatpush3.bf16.msra.mxu0 %v3685_v6  ;;  %v3694_v15 = vld [vmem:[%s4863_s1 + $0x98] sm:$0xff]   ;;  %v3698_v19 = vld [vmem:[%s4863_s1 + $0xa0] sm:$0xff]   ;;  %v3702_v23 = vld [vmem:[%s4863_s1 + $0xa8] sm:$0xff]  }
   0x9   :  { %3115 = vmatpush3.bf16.msra.mxu1 %v3686_v7  ;;  %3088 = vmatprep.subr.bf16.mxu0 %v3687_v8  ;;  %v3703_v24 = vld [vmem:[%s4863_s1 + $0x70] sm:$0xff]   ;;  %v3707_v28 = vld [vmem:[%s4863_s1 + $0x78] sm:$0xff]   ;;  %v2904_v32 = vld [vmem:[%s4864_s0 + $0x1] ss:$2 sm:$0xff] }
   0xa   :  { %3116 = vmatprep.subr.bf16.mxu1 %v3688_v9  ;;  %v3704_v25 = vld [vmem:[%s4863_s1 + $0xf0] sm:$0xff]   ;;  %v3708_v29 = vld [vmem:[%s4863_s1 + $0xf8] sm:$0xff]   ;;  %v64_v37 = vld [vmem:[%s4864_s0] ss:$2 sm:$0xff] }
   0xb   :  { %v3705_v26 = vld [vmem:[%s4863_s1 + $0x30] sm:$0xff]   ;;  %v3709_v30 = vld [vmem:[%s4863_s1 + $0x38] sm:$0xff]   ;;  %v513_v56 = vld [vmem:[%s4865_s6] sm:$0xff] }
   0xc   :  { %3089 = vmatpush3.bf16.msra.mxu0 %v3689_v10  ;;  %v3706_v27 = vld [vmem:[%s4863_s1 + $0xb0] sm:$0xff]   ;;  %v3710_v31 = vld [vmem:[%s4863_s1 + $0xb8] sm:$0xff]   ;;  %v514_v57 = vld [vmem:[%s4865_s6 + $0x8] sm:$0xff] }
   0xd   :  { %3117 = vmatpush3.bf16.msra.mxu1 %v3690_v11  ;;  %3090 = vmatprep.subr.bf16.mxu0 %v3691_v12  ;;  %v2905_v33 = vld [vmem:[%s4864_s0 + $0x11] ss:$2 sm:$0xff]  ;;  %v2903_v38 = vld [vmem:[%s4864_s0 + $0x10] ss:$2 sm:$0xff]  ;;  %v3568_v58 = vpack.c.bf16 %v514_v57, %v513_v56  ;;  %v517_v63 = vld [vmem:[%s4865_s6 + $0x20] sm:$0xff] }
   0xe   :  { %3118 = vmatprep.subr.bf16.mxu1 %v3692_v13  ;;  %v2908_v34 = vld [vmem:[%s4864_s0 + $0x3] ss:$2 sm:$0xff]  ;;  %v128_v35 = vpack.c.bf16 %v2905_v33, %v2904_v32  ;;  %v2909_v36 = vld [vmem:[%s4864_s0 + $0x13] ss:$2 sm:$0xff]  ;;  %v127_v40 = vpack.c.bf16 %v2903_v38, %v64_v37  ;;  %v2906_v41 = vld [vmem:[%s4864_s0 + $0x2] ss:$2 sm:$0xff] }
   0xf   :  { %v130_v39 = vpack.c.bf16 %v2909_v36, %v2908_v34  ;;  %v2907_v42 = vld [vmem:[%s4864_s0 + $0x12] ss:$2 sm:$0xff]  ;;  %v2912_v43 = vld [vmem:[%s4864_s0 + $0x23] ss:$2 sm:$0xff]  ;;  %v2913_v45 = vld [vmem:[%s4864_s0 + $0x33] ss:$2 sm:$0xff] }
  0x10   :  { %3091 = vmatpush3.bf16.msra.mxu0 %v3693_v14  ;;  %423 = vmatprep.mubr.bf16.mxu0 %v128_v35  ;;  %v129_v44 = vpack.c.bf16 %v2907_v42, %v2906_v41  ;;  %v2916_v46 = vld [vmem:[%s4864_s0 + $0x25] ss:$2 sm:$0xff]  ;;  %v2917_v47 = vld [vmem:[%s4864_s0 + $0x35] ss:$2 sm:$0xff]  ;;  %v132_v48 = vpack.c.bf16 %v2913_v45, %v2912_v43  ;;  %v2910_v50 = vld [vmem:[%s4864_s0 + $0x22] ss:$2 sm:$0xff] }
  0x11   :  { %3119 = vmatpush3.bf16.msra.mxu1 %v3694_v15  ;;  %3092 = vmatprep.subr.bf16.mxu0 %v3695_v16  ;;  %v134_v49 = vpack.c.bf16 %v2917_v47, %v2916_v46  ;;  %v2911_v51 = vld [vmem:[%s4864_s0 + $0x32] ss:$2 sm:$0xff]  ;;  %v518_v0 = vld [vmem:[%s4865_s6 + $0x28] sm:$0xff]  ;;  %v3853_v16 = vmov 0.0  }
  0x12   :  { %3120 = vmatprep.subr.bf16.mxu1 %v3696_v17  ;;  %472 = vmatprep.mubr.bf16.mxu1 %v130_v39  ;;  %v2914_v52 = vld [vmem:[%s4864_s0 + $0x24] ss:$2 sm:$0xff]  ;;  %v2915_v53 = vld [vmem:[%s4864_s0 + $0x34] ss:$2 sm:$0xff]  ;;  %v131_v54 = vpack.c.bf16 %v2911_v51, %v2910_v50  ;;  %v3574_v1 = vpack.c.bf16 %v518_v0, %v517_v63  ;;  %51 = vst [vmem:[#allocation2] sm:$0xff] %v3853_v16  ;;  %52 = vst [vmem:[#allocation2 + $0x8] sm:$0xff] %v3853_v16 }
  0x13   :  { %v133_v55 = vpack.c.bf16 %v2915_v53, %v2914_v52  ;;  %v515_v60 = vld [vmem:[%s4865_s6 + $0x10] sm:$0xff]  ;;  %v516_v61 = vld [vmem:[%s4865_s6 + $0x18] sm:$0xff]  ;;  %v521_v5 = vld [vmem:[%s4865_s6 + $0x40] sm:$0xff]  ;;  %53 = vst [vmem:[#allocation2 + $0x10] sm:$0xff] %v3853_v16 }
  0x14   :  { %3093 = vmatpush3.bf16.msra.mxu0 %v3697_v18  ;;  %v3571_v62 = vpack.c.bf16 %v516_v61, %v515_v60  ;;  %v519_v2 = vld [vmem:[%s4865_s6 + $0x30] sm:$0xff]  ;;  %v520_v3 = vld [vmem:[%s4865_s6 + $0x38] sm:$0xff]  ;;  %v522_v6 = vld [vmem:[%s4865_s6 + $0x48] sm:$0xff]  ;;  %54 = vst [vmem:[#allocation2 + $0x18] sm:$0xff] %v3853_v16 }
  0x15   :  { %3121 = vmatpush3.bf16.msra.mxu1 %v3698_v19  ;;  %3094 = vmatprep.subr.bf16.mxu0 %v3699_v20  ;;  %v3577_v4 = vpack.c.bf16 %v520_v3, %v519_v2  ;;  %v3580_v7 = vpack.c.bf16 %v522_v6, %v521_v5  ;;  %v523_v8 = vld [vmem:[%s4865_s6 + $0x50] sm:$0xff]  ;;  %v524_v9 = vld [vmem:[%s4865_s6 + $0x58] sm:$0xff]  ;;  %v525_v11 = vld [vmem:[%s4865_s6 + $0x60] sm:$0xff]  ;;  %55 = vst [vmem:[#allocation2 + $0x20] sm:$0xf] %v3853_v16 }
  0x16   :  { %3122 = vmatprep.subr.bf16.mxu1 %v3700_v21  ;;  %v3583_v10 = vpack.c.bf16 %v524_v9, %v523_v8  ;;  %v526_v12 = vld [vmem:[%s4865_s6 + $0x68] sm:$0xff]  ;;  %v527_v14 = vld [vmem:[%s4865_s6 + $0x70] sm:$0xff]  ;;  %v528_v15 = vld [vmem:[%s4865_s6 + $0x78] sm:$0xff]  ;;  %56 = vst [vmem:[#allocation3] sm:$0xff] %v3853_v16 }
  0x17   :  { %v3586_v13 = vpack.c.bf16 %v526_v12, %v525_v11  ;;  %57 = vst [vmem:[#allocation3 + $0x8] sm:$0xff] %v3853_v16  ;;  %58 = vst [vmem:[#allocation3 + $0x10] sm:$0xf] %v3853_v16  ;;  %v3589_v17 = vpack.c.bf16 %v528_v15, %v527_v14  ;;  %v619_v6 = vld [vmem:[%s4866_s10] sm:$0xff]  ;;  %v3718_v11 = vld [vmem:[%s4867_s2 + $0x88] sm:$0xff]  }
  0x18   :  { %3095 = vmatpush3.bf16.msra.mxu0 %v3701_v22  ;;  %59 = vst [vmem:[#allocation4] sm:$0xff] %v3853_v16  ;;  %60 = vst [vmem:[#allocation4 + $0x8] sm:$0xf] %v3853_v16  ;;  %v3712_v8 = vld [vmem:[%s4867_s2 + $0xc0] sm:$0xff]   ;;  %v3720_v12 = vld [vmem:[%s4867_s2 + $0xd0] sm:$0xff]  }
  0x19   :  { %3123 = vmatpush3.bf16.msra.mxu1 %v3702_v23  ;;  %3096 = vmatprep.subr.bf16.mxu0 %v3703_v24  ;;  %63 = vst [vmem:[#allocation10] sm:$0xff] %v3853_v16  ;;  %v3714_v9 = vld [vmem:[%s4867_s2 + $0x80] sm:$0xff]  }
  0x1a   :  { %3124 = vmatprep.subr.bf16.mxu1 %v3704_v25 }
  0x1c   :  { %3097 = vmatpush3.bf16.msra.mxu0 %v3705_v26 }
  0x1d   :  { %3125 = vmatpush3.bf16.msra.mxu1 %v3706_v27  ;;  %3098 = vmatprep.subr.bf16.mxu0 %v3707_v28 }
  0x1e   :  { %3126 = vmatprep.subr.bf16.mxu1 %v3708_v29 }
  0x20   :  { %3099 = vmatpush3.bf16.msra.mxu0 %v3709_v30 }
  0x21   :  { %3127 = vmatpush3.bf16.msra.mxu1 %v3710_v31  ;;  %3567 = vmatprep.subr.bf16.mxu0 %v3851_v59 }
  0x22   :  { %3432 = vmatprep.subr.mxu1 %v3853_v16 }
  0x23   :  { %424 = vmatmul.mubr.bf16.vlgmr.msra.gmra.mrb[0].mxu0 %v127_v40 }
  0x24   :  { %473 = vmatmul.mubr.bf16.vlgmr.msra.gmra.mrb[0].mxu1 %v129_v44  ;;  %431 = vmatprep.mubr.bf16.mxu0 %v132_v48 }
  0x25   :  { %480 = vmatprep.mubr.bf16.mxu1 %v134_v49  ;;  %3569 = vmatpush3.bf16.msra.mxu0 %v3568_v58 }
  0x26   :  { %3570 = vmatprep.subr.bf16.mxu0 %v3851_v59  ;;  %3433 = vmatpush3.msra.mxu1 %v619_v6 }
  0x29   :  { %3572 = vmatpush3.bf16.msra.mxu0 %v3571_v62 }
  0x2a   :  { %3573 = vmatprep.subr.bf16.mxu0 %v3851_v59 }
  0x2b   :  { %432 = vmatmul.mubr.bf16.gmra.mrb[4].mxu0 %v131_v54 }
  0x2c   :  { %481 = vmatmul.mubr.bf16.gmra.mrb[4].mxu1 %v133_v55  ;;  %3429 = vmatprep.mubr.msk.f32.mxu0 %vm3852_vm0, %v3853_v16 }
  0x2d   :  { %3575 = vmatpush3.bf16.msra.mxu0 %v3574_v1  ;;  %3434 = vmatprep.mubr.msk.f32.mxu1 %vm3852_vm0, %v3853_v16 }
  0x2e   :  { %3576 = vmatprep.subr.bf16.mxu0 %v3851_v59 }
  0x31   :  { %3578 = vmatpush3.bf16.msra.mxu0 %v3577_v4 }
  0x32   :  { %3579 = vmatprep.subr.bf16.mxu0 %v3851_v59 }
  0x35   :  { %3581 = vmatpush3.bf16.msra.mxu0 %v3580_v7  ;;  %v3711_v7 = vld [vmem:[%s4867_s2 + $0x40] sm:$0xff]  }
  0x36   :  { %3582 = vmatprep.subr.bf16.mxu0 %v3851_v59  ;;  %3159 = vmatprep.subr.bf16.mxu1 %v3711_v7 }
  0x39   :  { %3584 = vmatpush3.bf16.msra.mxu0 %v3583_v10  ;;  %v3716_v10 = vld [vmem:[%s4867_s2 + $0xc8] sm:$0xff]  }
  0x3a   :  { %3585 = vmatprep.subr.bf16.mxu0 %v3851_v59 }
  0x3d   :  { %3587 = vmatpush3.bf16.msra.mxu0 %v3586_v13  ;;  %v3722_v13 = vld [vmem:[%s4867_s2 + $0x90] sm:$0xff]  }
  0x3e   :  { %3588 = vmatprep.subr.bf16.mxu0 %v3851_v59 }
  0x41   :  { %3590 = vmatpush3.bf16.msra.mxu0 %v3589_v17 }
  0x42   :  { %3181 = vmatprep.subr.bf16.mxu0 %v3712_v8 }
  0xf6   :  { %v3100_v18 = vpop.f32.mrb[0].mxu0 }
  0xf7   :  { %v3128_v19 = vpop.f32.mrb[0].mxu1  ;;  %v3101_v20 = vpop.f32.mrb[1].mxu0 }
  0xf8   :  { %v3102_v21 = vadd.f32 %v3101_v20, %v3100_v18  ;;  %v3129_v22 = vpop.f32.mrb[1].mxu1  ;;  %v3103_v23 = vpop.f32.mrb[2].mxu0 }
  0xf9   :  { %v3130_v24 = vadd.f32 %v3129_v22, %v3128_v19  ;;  %v3131_v25 = vpop.f32.mrb[2].mxu1  ;;  %v3104_v26 = vpop.f32.mrb[3].mxu0 }
  0xfa   :  { %v3105_v27 = vadd.f32 %v3104_v26, %v3103_v23  ;;  %v3132_v28 = vpop.f32.mrb[3].mxu1  ;;  %v607_v23 = vld [vmem:[%s4868_s14] sm:$0x1]  ;;  %v608_v26 = vld [vmem:[%s4868_s14 + $0x4] sm:$0x1] }
  0xfb   :  { %v4151_v29 = vadd.f32 %v3130_v24, %v3102_v21  ;;  %v3133_v30 = vadd.f32 %v3132_v28, %v3131_v25 }
  0xfd   :  { %v4153_v31 = vadd.f32 %v3133_v30, %v3105_v27  ;;  %v498_v44 = vmul.f32 %v4151_v29, %v4151_v29 }
  0xfe   :  { %v3106_v32 = vpop.f32.mrb[4].mxu0 }
  0xff   :  { %v3134_v33 = vpop.f32.mrb[4].mxu1  ;;  %v3107_v34 = vpop.f32.mrb[5].mxu0  ;;  %v499_v38 = vmul.f32 %v4153_v31, %v4153_v31  ;;  %v489_v45 = vadd.f32 %v4153_v31, %v4151_v29 }
 0x100   :  { %v3108_v35 = vadd.f32 %v3107_v34, %v3106_v32  ;;  %v3135_v36 = vpop.f32.mrb[5].mxu1  ;;  %v3109_v37 = vpop.f32.mrb[6].mxu0  ;;  %v3713_v32 = vld [vmem:[%s4867_s2] sm:$0xff]  }
 0x101   :  { %v3136_v39 = vadd.f32 %v3135_v36, %v3134_v33  ;;  %v3137_v40 = vpop.f32.mrb[6].mxu1  ;;  %v3110_v41 = vpop.f32.mrb[7].mxu0  ;;  %v502_v48 = vadd.f32 %v499_v38, %v498_v44  ;;  %v3715_v33 = vld [vmem:[%s4867_s2 + $0x48] sm:$0xff]   ;;  %v3719_v36 = vld [vmem:[%s4867_s2 + $0x50] sm:$0xff]   ;;  %v3723_v38 = vld [vmem:[%s4867_s2 + $0x58] sm:$0xff]  }
 0x102   :  { %v3111_v42 = vadd.f32 %v3110_v41, %v3109_v37  ;;  %v3138_v43 = vpop.f32.mrb[7].mxu1  ;;  %v3721_v37 = vld [vmem:[%s4867_s2 + $0x10] sm:$0xff]   ;;  %v3726_v41 = vld [vmem:[%s4867_s2 + $0x98] sm:$0xff]   ;;  %v3729_v44 = vld [vmem:[%s4867_s2 + $0x20] sm:$0xff]  }
 0x103   :  { %v4161_v46 = vadd.f32 %v3136_v39, %v3108_v35  ;;  %v3139_v47 = vadd.f32 %v3138_v43, %v3137_v40  ;;  %v3717_v35 = vld [vmem:[%s4867_s2 + $0x8] sm:$0xff]   ;;  %v3724_v39 = vld [vmem:[%s4867_s2 + $0xd8] sm:$0xff]   ;;  %v3728_v43 = vld [vmem:[%s4867_s2 + $0xe0] sm:$0xff]  }
 0x104   :  { %v3725_v40 = vld [vmem:[%s4867_s2 + $0x18] sm:$0xff]  }
 0x105   :  { %v490_v49 = vadd.f32 %v489_v45, %v4161_v46  ;;  %v500_v50 = vmul.f32 %v4161_v46, %v4161_v46  ;;  %v4166_v51 = vadd.f32 %v3139_v47, %v3111_v42  ;;  %v3727_v42 = vld [vmem:[%s4867_s2 + $0x60] sm:$0xff]   ;;  %v3731_v47 = vld [vmem:[%s4867_s2 + $0x68] sm:$0xff]  }
 0x106   :  { %v3730_v45 = vld [vmem:[%s4867_s2 + $0xa0] sm:$0xff]  }
 0x107   :  { %v503_v52 = vadd.f32 %v502_v48, %v500_v50  ;;  %v491_v53 = vadd.f32 %v490_v49, %v4166_v51  ;;  %v501_v54 = vmul.f32 %v4166_v51, %v4166_v51  ;;  %v3732_v48 = vld [vmem:[%s4867_s2 + $0xe8] sm:$0xff]  }
 0x108   :  { %v3733_v49 = vld [vmem:[%s4867_s2 + $0x28] sm:$0xff]  }
 0x109   :  { %v492_v55 = vrot.slane %v491_v53, 4  ;;  %v504_v56 = vadd.f32 %v503_v52, %v501_v54  ;;  %v3734_v50 = vld [vmem:[%s4867_s2 + $0xa8] sm:$0xff]   ;;  %v3735_v52 = vld [vmem:[%s4867_s2 + $0x70] sm:$0xff]  }
 0x10a   :  { %v3737_v54 = vld [vmem:[%s4867_s2 + $0x30] sm:$0xff]  }
 0x10b   :  { %v493_v57 = vadd.f32 %v492_v55, %v491_v53  ;;  %v505_v58 = vrot.slane %v504_v56, 4  ;;  %v3736_v53 = vld [vmem:[%s4867_s2 + $0xf0] sm:$0xff]  }
 0x10c   :  { %v3738_v55 = vld [vmem:[%s4867_s2 + $0xb0] sm:$0xff]  }
 0x10d   :  { %v494_v60 = vrot.slane %v493_v57, 2  ;;  %v506_v61 = vadd.f32 %v505_v58, %v504_v56  ;;  %v3739_v56 = vld [vmem:[%s4867_s2 + $0x78] sm:$0xff]  }
 0x10e   :  { %v3741_v58 = vld [vmem:[%s4867_s2 + $0x38] sm:$0xff]  }
 0x10f   :  { %v495_v62 = vadd.f32 %v494_v60, %v493_v57  ;;  %v507_v63 = vrot.slane %v506_v61, 2  ;;  %v3740_v57 = vld [vmem:[%s4867_s2 + $0xf8] sm:$0xff]  }
 0x110   :  { %v3742_v60 = vld [vmem:[%s4867_s2 + $0xb8] sm:$0xff]  }
 0x111   :  { %v496_v0 = vrot.slane %v495_v62, 1  ;;  %v508_v1 = vadd.f32 %v507_v63, %v506_v61  ;;  %v694_v61 = vlaneseq }
 0x113   :  { %v509_v2 = vrot.slane %v508_v1, 1  ;;  %v497_v3 = vadd.f32 %v496_v0, %v495_v62  ;;  %v4280_v62 = vshrl.u32 %v694_v61, 7 }
 0x115   :  { %v510_v4 = vadd.f32 %v509_v2, %v508_v1  ;;  %v4283_v63 = vsub.s32 0, %v4280_v62  ;;  %v4286_v0 = vsub.s32 1, %v4280_v62 }
 0x117   :  { %v512_v5 = vsel %vm511_vm1, %v497_v3, %v510_v4 }
 0x118   :  { %3430 = vmatmul.mubr.f32.vlgmr.msra.gmra.mrb[8].mxu0 %v512_v5 }
 0x119   :  { %3182 = vmatpush3.bf16.msra.mxu0 %v3714_v9 }
 0x11a   :  { %3183 = vmatprep.subr.bf16.mxu0 %v3716_v10 }
 0x11d   :  { %3184 = vmatpush3.bf16.msra.mxu0 %v3718_v11 }
 0x11e   :  { %3185 = vmatprep.subr.bf16.mxu0 %v3720_v12 }
 0x121   :  { %3186 = vmatpush3.bf16.msra.mxu0 %v3722_v13 }
 0x122   :  { %3187 = vmatprep.subr.bf16.mxu0 %v3724_v39  ;;  %v1121_v39 = vld [vmem:[%s4869_s7 + $0x28] sm:$0xff] }
 0x125   :  { %3188 = vmatpush3.bf16.msra.mxu0 %v3726_v41  ;;  %v1122_v41 = vld [vmem:[%s4869_s7 + $0x30] sm:$0xff] }
 0x126   :  { %3189 = vmatprep.subr.bf16.mxu0 %v3728_v43  ;;  %v1124_v43 = vld [vmem:[%s4869_s7 + $0x40] sm:$0xff] }
 0x129   :  { %3190 = vmatpush3.bf16.msra.mxu0 %v3730_v45 }
 0x12a   :  { %3191 = vmatprep.subr.bf16.mxu0 %v3732_v48  ;;  %v1127_v48 = vld [vmem:[%s4869_s7 + $0x58] sm:$0xff] }
 0x12d   :  { %3192 = vmatpush3.bf16.msra.mxu0 %v3734_v50  ;;  %v1128_v50 = vld [vmem:[%s4869_s7 + $0x60] sm:$0xff] }
 0x12e   :  { %3193 = vmatprep.subr.bf16.mxu0 %v3736_v53 }
 0x131   :  { %3194 = vmatpush3.bf16.msra.mxu0 %v3738_v55  ;;  %v1131_v55 = vld [vmem:[%s4869_s7 + $0x78] sm:$0xff] }
 0x132   :  { %3195 = vmatprep.subr.bf16.mxu0 %v3740_v57 }
 0x135   :  { %3196 = vmatpush3.bf16.msra.mxu0 %v3742_v60 }
 0x136   :  { %3615 = vmatprep.subr.bf16.mxu0 %v3851_v59 }
 0x1eb   :  { %v595_v14 = vpop.f32.mrb[8].mxu0 }
 0x1ec   :  { %v599_v15 = vmul.f32 0.001953125, %v595_v14  ;;  %v3431_v17 = vpop.f32.mrb[9].mxu0 }
 0x1ee   :  { %v600_v18 = vmul.f32 %v599_v15, %v599_v15 }
 0x1f0   :  { %v602_v19 = vrot.slane %v600_v18, 7 }
 0x1f2   :  { %v604_v20 = vsub.f32 %v599_v15, %v602_v19 }
 0x1f4   :  { %v605_v21 = vadd.f32 1e-05, %v604_v20 }
 0x1f6   :  { %3842 = vrsqrt.f32 %v605_v21 }
 0x200   :  { %v3843_v22 = vpop.eup %3842 }
 0x201   :  { %v610_v24 = vrot.slane %v3843_v22, 1 }
 0x203   :  { %v612_v25 = vmul.f32 %v610_v24, %v607_v23 }
 0x205   :  { %v613_v27 = vmul.f32 %v612_v25, %v599_v15 }
 0x207   :  { %v614_v28 = vsub.f32 %v608_v26, %v613_v27 }
 0x209   :  { %v616_v30 = vrot.slane %v614_v28, 7 }
 0x20b   :  { %v618_v34 = vsel %vm511_vm1, %v612_v25, %v616_v30 }
 0x20c   :  { %3435 = vmatmul.mubr.msk.f32.vlgmr.msra.gmra.mrb[8].mxu1 %vm620_vm2, %v618_v34  ;;  %vm2510_vm2 = vcmask 781314  }
 0x20d   :  { %3160 = vmatpush3.bf16.msra.mxu1 %v3713_v32 }
 0x20e   :  { %3161 = vmatprep.subr.bf16.mxu1 %v3715_v33 }
 0x211   :  { %3162 = vmatpush3.bf16.msra.mxu1 %v3717_v35  ;;  %v1118_v35 = vld [vmem:[%s4869_s7 + $0x10] sm:$0xff] }
 0x212   :  { %3163 = vmatprep.subr.bf16.mxu1 %v3719_v36  ;;  %v1119_v36 = vld [vmem:[%s4869_s7 + $0x18] sm:$0xff] }
 0x215   :  { %3164 = vmatpush3.bf16.msra.mxu1 %v3721_v37  ;;  %v3595_v37 = vpack.c.bf16 %v1119_v36, %v1118_v35 }
 0x216   :  { %3165 = vmatprep.subr.bf16.mxu1 %v3723_v38  ;;  %v1120_v38 = vld [vmem:[%s4869_s7 + $0x20] sm:$0xff] }
 0x219   :  { %3166 = vmatpush3.bf16.msra.mxu1 %v3725_v40  ;;  %v3598_v40 = vpack.c.bf16 %v1121_v39, %v1120_v38 }
 0x21a   :  { %3167 = vmatprep.subr.bf16.mxu1 %v3727_v42 }
 0x21d   :  { %3168 = vmatpush3.bf16.msra.mxu1 %v3729_v44  ;;  %v1125_v44 = vld [vmem:[%s4869_s7 + $0x48] sm:$0xff] }
 0x21e   :  { %3169 = vmatprep.subr.bf16.mxu1 %v3731_v47  ;;  %v3604_v45 = vpack.c.bf16 %v1125_v44, %v1124_v43  ;;  %v1126_v47 = vld [vmem:[%s4869_s7 + $0x50] sm:$0xff] }
 0x221   :  { %3170 = vmatpush3.bf16.msra.mxu1 %v3733_v49  ;;  %v3607_v49 = vpack.c.bf16 %v1127_v48, %v1126_v47  ;;  %v3745_v48 = vld [vmem:[%s4871_s3] sm:$0xff]  }
 0x222   :  { %3171 = vmatprep.subr.bf16.mxu1 %v3735_v52  ;;  %v1129_v52 = vld [vmem:[%s4869_s7 + $0x68] sm:$0xff] }
 0x223   :  { %v3610_v53 = vpack.c.bf16 %v1129_v52, %v1128_v50  ;;  %v3747_v50 = vld [vmem:[%s4871_s3 + $0x48] sm:$0xff]  }
 0x224   :  { %v3748_v52 = vld [vmem:[%s4871_s3 + $0xc8] sm:$0xff]  }
 0x225   :  { %3172 = vmatpush3.bf16.msra.mxu1 %v3737_v54  ;;  %v1130_v54 = vld [vmem:[%s4869_s7 + $0x70] sm:$0xff] }
 0x226   :  { %3173 = vmatprep.subr.bf16.mxu1 %v3739_v56  ;;  %v3613_v56 = vpack.c.bf16 %v1131_v55, %v1130_v54  ;;  %v3750_v54 = vld [vmem:[%s4871_s3 + $0x88] sm:$0xff]   ;;  %v3751_v55 = vld [vmem:[%s4871_s3 + $0x50] sm:$0xff]  }
 0x229   :  { %3174 = vmatpush3.bf16.msra.mxu1 %v3741_v58 }
 0x22a   :  { %3591 = vmatprep.subr.bf16.mxu1 %v3851_v59 }
 0x2df   :  { %v690_v1 = vpop.f32.mrb[8].mxu1 }
 0x2e0   :  { %v697_v2 = vrot.slane %v690_v1, %v4283_v63  ;;  %v3436_v3 = vpop.f32.mrb[9].mxu1  ;;  %v705_v4 = vrot.slane %v690_v1, %v4286_v0 }
 0x2e2   :  { %v698_v5 = vmul.f32 %v697_v2, %v4151_v29  ;;  %v699_v6 = vmul.f32 %v697_v2, %v4153_v31  ;;  %v700_v7 = vmul.f32 %v697_v2, %v4161_v46  ;;  %v701_v8 = vmul.f32 %v697_v2, %v4166_v51  ;;  %v1116_v46 = vld [vmem:[%s4869_s7] sm:$0xff]  ;;  %v1117_v51 = vld [vmem:[%s4869_s7 + $0x8] sm:$0xff] }
 0x2e3   :  { %v3592_v33 = vpack.c.bf16 %v1117_v51, %v1116_v46 }
 0x2e4   :  { %v706_v9 = vadd.f32 %v705_v4, %v698_v5  ;;  %v707_v10 = vadd.f32 %v705_v4, %v699_v6  ;;  %v708_v11 = vadd.f32 %v705_v4, %v700_v7  ;;  %v709_v12 = vadd.f32 %v705_v4, %v701_v8 }
 0x2e6   :  { %vm710_vm3 = vcmp.ge.f32.partialorder %v706_v9, 0.0  ;;  %vm711_vm4 = vcmp.ge.f32.partialorder %v707_v10, 0.0  ;;  %vm712_vm5 = vcmp.ge.f32.partialorder %v708_v11, 0.0  ;;  %vm713_vm6 = vcmp.ge.f32.partialorder %v709_v12, 0.0 }
 0x2e7   :  { %v714_v13 = vmul.f32 0.2, %v706_v9  ;;  %v715_v14 = vmul.f32 0.2, %v707_v10  ;;  %v716_v15 = vmul.f32 0.2, %v708_v11 }
 0x2e8   :  { %v717_v17 = vmul.f32 0.2, %v709_v12 }
 0x2e9   :  { %v718_v18 = vsel %vm710_vm3, %v706_v9, %v714_v13  ;;  %v719_v29 = vsel %vm711_vm4, %v707_v10, %v715_v14  ;;  %v720_v19 = vsel %vm712_vm5, %v708_v11, %v716_v15  ;;  %vm2897_vm3 = vcmask 1024  }
 0x2ea   :  { %v721_v31 = vsel %vm713_vm6, %v709_v12, %v717_v17  ;;  %722 = vst [vmem:[#allocation2 + $0x1] sm:$0xff] %v718_v18  ;;  %723 = vst [vmem:[#allocation2 + $0x9] sm:$0xff] %v719_v29 }
 0x2eb   :  { %724 = vst [vmem:[#allocation2 + $0x13] sm:$0xff] %v720_v19  ;;  %725 = vst [vmem:[#allocation2 + $0x1b] sm:$0xff] %v721_v31 }
 0x2f1   :  { %v729_v20 = vld [vmem:[#allocation2 + $0x1] ss:$2 sm:$0xff]  ;;  %v726_v22 = vld [vmem:[#allocation2] ss:$2 sm:$0xff] }
 0x2f2   :  { %v735_v21 = vld [vmem:[#allocation2 + $0x3] ss:$2 sm:$0xff]  ;;  %v741_v23 = vld [vmem:[#allocation2 + $0x13] ss:$2 sm:$0xff]  ;;  %v738_v25 = vld [vmem:[#allocation2 + $0x12] ss:$2 sm:$0xff] }
 0x2f3   :  { %v747_v24 = vld [vmem:[#allocation2 + $0x15] ss:$2 sm:$0xff]  ;;  %v758_v26 = vpack.c.bf16 %v741_v23, %v729_v20  ;;  %v757_v28 = vpack.c.bf16 %v738_v25, %v726_v22  ;;  %v732_v30 = vld [vmem:[#allocation2 + $0x2] ss:$2 sm:$0xff] }
 0x2f4   :  { %v760_v27 = vpack.c.bf16 %v747_v24, %v735_v21  ;;  %v744_v32 = vld [vmem:[#allocation2 + $0x14] ss:$2 sm:$0xff] }
 0x2f5   :  { %v759_v34 = vpack.c.bf16 %v744_v32, %v732_v30  ;;  %1049 = vmatprep.mubr.bf16.mxu1 %v758_v26  ;;  %v1222_v25 = vld [vmem:[%s4870_s11] sm:$0xff]  ;;  %v1223_v26 = vld [vmem:[%s4870_s11 + $0x8] sm:$0xff] }
 0x2f6   :  { %1090 = vmatprep.mubr.bf16.mxu0 %v760_v27  ;;  %1050 = vmatmul.mubr.bf16.vlgmr.msra.gmra.mrb[12].mxu1 %v757_v28  ;;  %v3616_v27 = vpack.c.bf16 %v1223_v26, %v1222_v25  ;;  %v3743_v28 = vld [vmem:[%s4871_s3 + $0x40] sm:$0xff]  }
 0x2f7   :  { %1091 = vmatmul.mubr.bf16.vlgmr.msra.gmra.mrb[12].mxu0 %v759_v34  ;;  %3593 = vmatpush3.bf16.msra.mxu1 %v3592_v33  ;;  %v3744_v30 = vld [vmem:[%s4871_s3 + $0xc0] sm:$0xff]  }
 0x2f8   :  { %3469 = vmatprep.mubr.msk.f32.mxu1 %vm3852_vm0, %v3853_v16  ;;  %3594 = vmatprep.subr.bf16.mxu1 %v3851_v59 }
 0x2f9   :  { %3476 = vmatprep.mubr.msk.f32.mxu0 %vm3852_vm0, %v3853_v16  ;;  %v1123_v16 = vld [vmem:[%s4869_s7 + $0x38] sm:$0xff]  ;;  %3617 = vmatpush3.bf16.msra.mxu0 %v3616_v27 }
 0x2fa   :  { %v3601_v42 = vpack.c.bf16 %v1123_v16, %v1122_v41  ;;  %3223 = vmatprep.subr.bf16.mxu0 %v3743_v28 }
 0x2fb   :  { %3596 = vmatpush3.bf16.msra.mxu1 %v3595_v37 }
 0x2fc   :  { %3597 = vmatprep.subr.bf16.mxu1 %v3851_v59 }
 0x2ff   :  { %3599 = vmatpush3.bf16.msra.mxu1 %v3598_v40  ;;  %v1210_v40 = vld [vmem:[%s4868_s14 + $0x1] sm:$0x1] }
 0x300   :  { %3600 = vmatprep.subr.bf16.mxu1 %v3851_v59 }
 0x303   :  { %3602 = vmatpush3.bf16.msra.mxu1 %v3601_v42  ;;  %v1211_v42 = vld [vmem:[%s4868_s14 + $0x5] sm:$0x1] }
 0x304   :  { %3603 = vmatprep.subr.bf16.mxu1 %v3851_v59 }
 0x307   :  { %3605 = vmatpush3.bf16.msra.mxu1 %v3604_v45 }
 0x308   :  { %3606 = vmatprep.subr.bf16.mxu1 %v3851_v59 }
 0x30b   :  { %3608 = vmatpush3.bf16.msra.mxu1 %v3607_v49  ;;  %v3746_v49 = vld [vmem:[%s4871_s3 + $0x80] sm:$0xff]  }
 0x30c   :  { %3609 = vmatprep.subr.bf16.mxu1 %v3851_v59 }
 0x30f   :  { %3611 = vmatpush3.bf16.msra.mxu1 %v3610_v53  ;;  %v3749_v53 = vld [vmem:[%s4871_s3 + $0x8] sm:$0xff]  }
 0x310   :  { %3612 = vmatprep.subr.bf16.mxu1 %v3851_v59 }
 0x313   :  { %3614 = vmatpush3.bf16.msra.mxu1 %v3613_v56  ;;  %v3752_v56 = vld [vmem:[%s4871_s3 + $0xd0] sm:$0xff]  }
 0x314   :  { %3245 = vmatprep.subr.bf16.mxu1 %v3744_v30 }
 0x3c9   :  { %v3175_v57 = vpop.f32.mrb[12].mxu1 }
 0x3ca   :  { %v3197_v58 = vpop.f32.mrb[12].mxu0  ;;  %v3176_v60 = vpop.f32.mrb[13].mxu1 }
 0x3cb   :  { %v3198_v61 = vpop.f32.mrb[13].mxu0  ;;  %v3177_v1 = vadd.f32 %v3176_v60, %v3175_v57  ;;  %v3178_v3 = vpop.f32.mrb[14].mxu1  ;;  %v3753_v57 = vld [vmem:[%s4871_s3 + $0x10] sm:$0xff]   ;;  %v3755_v60 = vld [vmem:[%s4871_s3 + $0x58] sm:$0xff]  }
 0x3cc   :  { %v3199_v2 = vadd.f32 %v3198_v61, %v3197_v58  ;;  %v3200_v4 = vpop.f32.mrb[14].mxu0  ;;  %v3179_v5 = vpop.f32.mrb[15].mxu1  ;;  %v3754_v58 = vld [vmem:[%s4871_s3 + $0x90] sm:$0xff]   ;;  %v3756_v61 = vld [vmem:[%s4871_s3 + $0xd8] sm:$0xff]  }
 0x3cd   :  { %v3201_v6 = vpop.f32.mrb[15].mxu0  ;;  %v3180_v8 = vadd.f32 %v3179_v5, %v3178_v3  ;;  %v3759_v3 = vld [vmem:[%s4871_s3 + $0x60] sm:$0xff]  }
 0x3ce   :  { %v4353_v7 = vadd.f32 %v3199_v2, %v3177_v1  ;;  %v3202_v9 = vadd.f32 %v3201_v6, %v3200_v4  ;;  %v3757_v1 = vld [vmem:[%s4871_s3 + $0x18] sm:$0xff]   ;;  %v3760_v4 = vld [vmem:[%s4871_s3 + $0xe0] sm:$0xff]  }
 0x3cf   :  { %v3758_v2 = vld [vmem:[%s4871_s3 + $0x98] sm:$0xff]   ;;  %v3761_v5 = vld [vmem:[%s4871_s3 + $0x20] sm:$0xff]  }
 0x3d0   :  { %v4355_v10 = vadd.f32 %v3202_v9, %v3180_v8  ;;  %v1106_v11 = vmul.f32 %v4353_v7, %v4353_v7  ;;  %v3762_v6 = vld [vmem:[%s4871_s3 + $0xa0] sm:$0xff]   ;;  %v3763_v8 = vld [vmem:[%s4871_s3 + $0x68] sm:$0xff]  }
 0x3d1   :  { %v3764_v9 = vld [vmem:[%s4871_s3 + $0xe8] sm:$0xff]  }
 0x3d2   :  { %v1099_v12 = vadd.f32 %v4355_v10, %v4353_v7  ;;  %v1107_v13 = vmul.f32 %v4355_v10, %v4355_v10 }
 0x3d4   :  { %v1100_v14 = vrot.slane %v1099_v12, 4  ;;  %v1108_v15 = vadd.f32 %v1107_v13, %v1106_v11  ;;  %v3765_v11 = vld [vmem:[%s4871_s3 + $0x28] sm:$0xff]   ;;  %v3767_v13 = vld [vmem:[%s4871_s3 + $0x70] sm:$0xff]  }
 0x3d6   :  { %v1101_v17 = vadd.f32 %v1100_v14, %v1099_v12  ;;  %v1109_v18 = vrot.slane %v1108_v15, 4  ;;  %v3766_v12 = vld [vmem:[%s4871_s3 + $0xa8] sm:$0xff]   ;;  %v3768_v14 = vld [vmem:[%s4871_s3 + $0xf0] sm:$0xff]  }
 0x3d8   :  { %v1102_v29 = vrot.slane %v1101_v17, 2  ;;  %v1110_v19 = vadd.f32 %v1109_v18, %v1108_v15  ;;  %v3769_v15 = vld [vmem:[%s4871_s3 + $0x30] sm:$0xff]   ;;  %v3771_v18 = vld [vmem:[%s4871_s3 + $0x78] sm:$0xff]  }
 0x3da   :  { %v1103_v31 = vadd.f32 %v1102_v29, %v1101_v17  ;;  %v1111_v46 = vrot.slane %v1110_v19, 2  ;;  %v3770_v17 = vld [vmem:[%s4871_s3 + $0xb0] sm:$0xff]   ;;  %v3772_v29 = vld [vmem:[%s4871_s3 + $0xf8] sm:$0xff]  }
 0x3dc   :  { %v1104_v51 = vrot.slane %v1103_v31, 1  ;;  %v1112_v20 = vadd.f32 %v1111_v46, %v1110_v19  ;;  %v3773_v19 = vld [vmem:[%s4871_s3 + $0x38] sm:$0xff]  }
 0x3de   :  { %v1113_v21 = vrot.slane %v1112_v20, 1  ;;  %v1105_v22 = vadd.f32 %v1104_v51, %v1103_v31  ;;  %v3774_v31 = vld [vmem:[%s4871_s3 + $0xb8] sm:$0xff]  }
 0x3e0   :  { %v1114_v23 = vadd.f32 %v1113_v21, %v1112_v20 }
 0x3e2   :  { %v1115_v24 = vsel %vm511_vm1, %v1105_v22, %v1114_v23 }
 0x3e3   :  { %3470 = vmatmul.mubr.f32.vlgmr.msra.gmra.mrb[10].mxu1 %v1115_v24 }
 0x3e4   :  { %3246 = vmatpush3.bf16.msra.mxu1 %v3746_v49 }
 0x3e5   :  { %3247 = vmatprep.subr.bf16.mxu1 %v3748_v52  ;;  %v1713_v52 = vld [vmem:[%s4872_s8 + $0x10] sm:$0xff] }
 0x3e8   :  { %3248 = vmatpush3.bf16.msra.mxu1 %v3750_v54 }
 0x3e9   :  { %3249 = vmatprep.subr.bf16.mxu1 %v3752_v56 }
 0x3ec   :  { %3250 = vmatpush3.bf16.msra.mxu1 %v3754_v58  ;;  %v1715_v58 = vld [vmem:[%s4872_s8 + $0x20] sm:$0xff] }
 0x3ed   :  { %3251 = vmatprep.subr.bf16.mxu1 %v3756_v61 }
 0x3f0   :  { %3252 = vmatpush3.bf16.msra.mxu1 %v3758_v2  ;;  %v1718_v2 = vld [vmem:[%s4872_s8 + $0x38] sm:$0xff] }
 0x3f1   :  { %3253 = vmatprep.subr.bf16.mxu1 %v3760_v4  ;;  %v1719_v4 = vld [vmem:[%s4872_s8 + $0x40] sm:$0xff] }
 0x3f4   :  { %3254 = vmatpush3.bf16.msra.mxu1 %v3762_v6 }
 0x3f5   :  { %3255 = vmatprep.subr.bf16.mxu1 %v3764_v9  ;;  %v1722_v9 = vld [vmem:[%s4872_s8 + $0x58] sm:$0xff] }
 0x3f8   :  { %3256 = vmatpush3.bf16.msra.mxu1 %v3766_v12 }
 0x3f9   :  { %3257 = vmatprep.subr.bf16.mxu1 %v3768_v14 }
 0x3fc   :  { %3258 = vmatpush3.bf16.msra.mxu1 %v3770_v17  ;;  %v1726_v17 = vld [vmem:[%s4872_s8 + $0x78] sm:$0xff] }
 0x3fd   :  { %3259 = vmatprep.subr.bf16.mxu1 %v3772_v29 }
 0x400   :  { %3260 = vmatpush3.bf16.msra.mxu1 %v3774_v31 }
 0x401   :  { %3642 = vmatprep.subr.bf16.mxu1 %v3851_v59 }
 0x4b6   :  { %v1198_v32 = vpop.f32.mrb[10].mxu1 }
 0x4b7   :  { %v1202_v33 = vmul.f32 0.0078125, %v1198_v32  ;;  %v3471_v34 = vpop.f32.mrb[11].mxu1 }
 0x4b9   :  { %v1203_v35 = vmul.f32 %v1202_v33, %v1202_v33 }
 0x4bb   :  { %v1205_v36 = vrot.slane %v1203_v35, 7 }
 0x4bd   :  { %v1207_v37 = vsub.f32 %v1202_v33, %v1205_v36 }
 0x4bf   :  { %v1208_v38 = vadd.f32 1e-05, %v1207_v37 }
 0x4c1   :  { %3844 = vrsqrt.f32 %v1208_v38 }
 0x4cb   :  { %v3845_v39 = vpop.eup %3844 }
 0x4cc   :  { %v1213_v41 = vrot.slane %v3845_v39, 1 }
 0x4ce   :  { %v1215_v16 = vmul.f32 %v1213_v41, %v1210_v40 }
 0x4d0   :  { %v1216_v43 = vmul.f32 %v1215_v16, %v1202_v33 }
 0x4d2   :  { %v1217_v44 = vsub.f32 %v1211_v42, %v1216_v43  ;;  %v1711_v42 = vld [vmem:[%s4872_s8] sm:$0xff]  ;;  %v1712_v43 = vld [vmem:[%s4872_s8 + $0x8] sm:$0xff] }
 0x4d3   :  { %v3619_v49 = vpack.c.bf16 %v1712_v43, %v1711_v42  ;;  %v1819_v42 = vld [vmem:[%s4873_s12 + $0x10] sm:$0xff]  ;;  %v1820_v43 = vld [vmem:[%s4873_s12 + $0x18] sm:$0xff] }
 0x4d4   :  { %v1219_v45 = vrot.slane %v1217_v44, 7 }
 0x4d6   :  { %v1221_v47 = vsel %vm511_vm1, %v1215_v16, %v1219_v45 }
 0x4d7   :  { %3477 = vmatmul.mubr.msk.f32.vlgmr.msra.gmra.mrb[10].mxu0 %vm1224_vm7, %v1221_v47 }
 0x4d8   :  { %3224 = vmatpush3.bf16.msra.mxu0 %v3745_v48 }
 0x4d9   :  { %3225 = vmatprep.subr.bf16.mxu0 %v3747_v50 }
 0x4dc   :  { %3226 = vmatpush3.bf16.msra.mxu0 %v3749_v53  ;;  %v1714_v53 = vld [vmem:[%s4872_s8 + $0x18] sm:$0xff] }
 0x4dd   :  { %3227 = vmatprep.subr.bf16.mxu0 %v3751_v55  ;;  %v3622_v56 = vpack.c.bf16 %v1714_v53, %v1713_v52 }
 0x4e0   :  { %3228 = vmatpush3.bf16.msra.mxu0 %v3753_v57  ;;  %v4491_v57 = vld [vmem:[#allocation4] sm:$0xff] }
 0x4e1   :  { %3229 = vmatprep.subr.bf16.mxu0 %v3755_v60  ;;  %v1716_v60 = vld [vmem:[%s4872_s8 + $0x28] sm:$0xff]  ;;  %62 = vst.msk [vmem:[#allocation5] sm:$0xff] %vm61_vm12, %v4491_v57 }
 0x4e2   :  { %v3625_v61 = vpack.c.bf16 %v1716_v60, %v1715_v58  ;;  %v1806_v60 = vld [vmem:[%s4868_s14 + $0x6] sm:$0x1] }
 0x4e4   :  { %3230 = vmatpush3.bf16.msra.mxu0 %v3757_v1  ;;  %v1717_v1 = vld [vmem:[%s4872_s8 + $0x30] sm:$0xff] }
 0x4e5   :  { %3231 = vmatprep.subr.bf16.mxu0 %v3759_v3  ;;  %v3628_v3 = vpack.c.bf16 %v1718_v2, %v1717_v1 }
 0x4e8   :  { %3232 = vmatpush3.bf16.msra.mxu0 %v3761_v5  ;;  %v1720_v5 = vld [vmem:[%s4872_s8 + $0x48] sm:$0xff] }
 0x4e9   :  { %3233 = vmatprep.subr.bf16.mxu0 %v3763_v8  ;;  %v3631_v6 = vpack.c.bf16 %v1720_v5, %v1719_v4  ;;  %v1721_v8 = vld [vmem:[%s4872_s8 + $0x50] sm:$0xff]  ;;  %v3775_v4 = vld [vmem:[%s4874_s4 + $0x40] sm:$0xff]  }
 0x4ea   :  { %v3634_v12 = vpack.c.bf16 %v1722_v9, %v1721_v8  ;;  %v3776_v5 = vld [vmem:[%s4874_s4 + $0xc0] sm:$0xff]   ;;  %v3779_v9 = vld [vmem:[%s4874_s4 + $0x48] sm:$0xff]  }
 0x4eb   :  { %v3778_v8 = vld [vmem:[%s4874_s4 + $0x80] sm:$0xff]  }
 0x4ec   :  { %3234 = vmatpush3.bf16.msra.mxu0 %v3765_v11  ;;  %v1723_v11 = vld [vmem:[%s4872_s8 + $0x60] sm:$0xff] }
 0x4ed   :  { %3235 = vmatprep.subr.bf16.mxu0 %v3767_v13  ;;  %v1724_v13 = vld [vmem:[%s4872_s8 + $0x68] sm:$0xff] }
 0x4ee   :  { %v3637_v14 = vpack.c.bf16 %v1724_v13, %v1723_v11  ;;  %v3780_v11 = vld [vmem:[%s4874_s4 + $0xc8] sm:$0xff]  }
 0x4ef   :  { %v3782_v13 = vld [vmem:[%s4874_s4 + $0x88] sm:$0xff]  }
 0x4f0   :  { %3236 = vmatpush3.bf16.msra.mxu0 %v3769_v15  ;;  %v1725_v15 = vld [vmem:[%s4872_s8 + $0x70] sm:$0xff] }
 0x4f1   :  { %3237 = vmatprep.subr.bf16.mxu0 %v3771_v18  ;;  %v3640_v18 = vpack.c.bf16 %v1726_v17, %v1725_v15  ;;  %v3784_v15 = vld [vmem:[%s4874_s4 + $0xd0] sm:$0xff]  }
 0x4f2   :  { %v3785_v17 = vld [vmem:[%s4874_s4 + $0x10] sm:$0xff]  }
 0x4f4   :  { %3238 = vmatpush3.bf16.msra.mxu0 %v3773_v19 }
 0x4f5   :  { %3618 = vmatprep.subr.bf16.mxu0 %v3851_v59 }
 0x5aa   :  { %v1294_v46 = vpop.f32.mrb[10].mxu0 }
 0x5ab   :  { %v1301_v51 = vrot.slane %v1294_v46, %v4283_v63  ;;  %v3478_v20 = vpop.f32.mrb[11].mxu0  ;;  %v1307_v23 = vrot.slane %v1294_v46, %v4286_v0 }
 0x5ad   :  { %v1302_v21 = vmul.f32 %v1301_v51, %v4353_v7  ;;  %v1303_v22 = vmul.f32 %v1301_v51, %v4355_v10 }
 0x5af   :  { %v1308_v24 = vadd.f32 %v1307_v23, %v1302_v21  ;;  %v1309_v25 = vadd.f32 %v1307_v23, %v1303_v22 }
 0x5b1   :  { %vm1310_vm8 = vcmp.ge.f32.partialorder %v1308_v24, 0.0  ;;  %vm1311_vm9 = vcmp.ge.f32.partialorder %v1309_v25, 0.0  ;;  %v1312_v26 = vmul.f32 0.2, %v1308_v24  ;;  %v1313_v27 = vmul.f32 0.2, %v1309_v25 }
 0x5b3   :  { %v1314_v28 = vsel %vm1310_vm8, %v1308_v24, %v1312_v26  ;;  %v1315_v30 = vsel %vm1311_vm9, %v1309_v25, %v1313_v27 }
 0x5b4   :  { %1316 = vst [vmem:[#allocation3 + $0x1] sm:$0xff] %v1314_v28  ;;  %1317 = vst [vmem:[#allocation3 + $0xb] sm:$0xff] %v1315_v30 }
 0x5bb   :  { %v1321_v32 = vld [vmem:[#allocation3 + $0x1] ss:$2 sm:$0xf]  ;;  %v1336_v33 = vld [vmem:[#allocation3 + $0xb] ss:$2 sm:$0xf] }
 0x5bc   :  { %1322 = vst [vmem:[#allocation8 + $0x8] sm:$0xf] %v1321_v32  ;;  %v1338_v34 = vrot.slane %v1336_v33, 4  ;;  %v1327_v35 = vld [vmem:[#allocation3 + $0x3] ss:$2 sm:$0xf] }
 0x5bd   :  { %1328 = vst [vmem:[#allocation8 + $0x18] sm:$0xf] %v1327_v35  ;;  %v1348_v7 = vld [vmem:[#allocation3 + $0xd] ss:$2 sm:$0xf] }
 0x5be   :  { %v1318_v10 = vld [vmem:[#allocation3] ss:$2 sm:$0xf]  ;;  %1340 = vst [vmem:[#allocation8 + $0x8] sm:$0xf0] %v1338_v34  ;;  %v1350_v36 = vrot.slane %v1348_v7, 4 }
 0x5bf   :  { %1319 = vst [vmem:[#allocation8] sm:$0xf] %v1318_v10  ;;  %v1330_v37 = vld [vmem:[#allocation3 + $0xa] ss:$2 sm:$0xf] }
 0x5c0   :  { %v1332_v38 = vrot.slane %v1330_v37, 4  ;;  %v1324_v39 = vld [vmem:[#allocation3 + $0x2] ss:$2 sm:$0xf]  ;;  %1352 = vst [vmem:[#allocation8 + $0x18] sm:$0xf0] %v1350_v36 }
 0x5c1   :  { %1325 = vst [vmem:[#allocation8 + $0x10] sm:$0xf] %v1324_v39  ;;  %v1342_v40 = vld [vmem:[#allocation3 + $0xc] ss:$2 sm:$0xf] }
 0x5c2   :  { %1334 = vst [vmem:[#allocation8] sm:$0xf0] %v1332_v38  ;;  %v1344_v41 = vrot.slane %v1342_v40, 4  ;;  %v1817_v40 = vld [vmem:[%s4873_s12] sm:$0xff] }
 0x5c4   :  { %1346 = vst [vmem:[#allocation8 + $0x10] sm:$0xf0] %v1344_v41  ;;  %v1818_v41 = vld [vmem:[%s4873_s12 + $0x8] sm:$0xff] }
 0x5c5   :  { %v1354_v16 = vld [vmem:[#allocation8 + $0x8] sm:$0xff] }
 0x5c6   :  { %v1358_v44 = vpack.c.bf16 %v1354_v16, %v1354_v16  ;;  %v3643_v16 = vpack.c.bf16 %v1818_v41, %v1817_v40 }
 0x5c7   :  { %v1356_v45 = vld [vmem:[#allocation8 + $0x18] sm:$0xff] }
 0x5c8   :  { %1649 = vmatprep.mubr.bf16.mxu0 %v1358_v44  ;;  %v1360_v47 = vpack.c.bf16 %v1356_v45, %v1356_v45  ;;  %v3646_v44 = vpack.c.bf16 %v1820_v43, %v1819_v42 }
 0x5c9   :  { %v1353_v48 = vld [vmem:[#allocation8] sm:$0xff] }
 0x5ca   :  { %v1357_v50 = vpack.c.bf16 %v1353_v48, %v1353_v48  ;;  %1689 = vmatprep.mubr.bf16.mxu1 %v1360_v47 }
 0x5cb   :  { %v1355_v54 = vld [vmem:[#allocation8 + $0x10] sm:$0xff] }
 0x5cc   :  { %1650 = vmatmul.mubr.bf16.vlgmr.msra.gmra.mrb[16].mxu0 %v1357_v50  ;;  %v1359_v55 = vpack.c.bf16 %v1355_v54, %v1355_v54 }
 0x5cd   :  { %3620 = vmatpush3.bf16.msra.mxu0 %v3619_v49  ;;  %3511 = vmatprep.mubr.msk.f32.mxu0 %vm3852_vm0, %v4491_v57 }
 0x5ce   :  { %1690 = vmatmul.mubr.bf16.vlgmr.msra.gmra.mrb[16].mxu1 %v1359_v55  ;;  %3621 = vmatprep.subr.bf16.mxu0 %v3851_v59  ;;  %v1805_v55 = vld [vmem:[%s4868_s14 + $0x2] sm:$0x1] }
 0x5cf   :  { %3522 = vmatprep.mubr.msk.f32.mxu1 %vm3852_vm0, %v4491_v57  ;;  %3644 = vmatpush3.bf16.msra.mxu1 %v3643_v16 }
 0x5d0   :  { %3645 = vmatprep.subr.bf16.mxu1 %v3851_v59 }
 0x5d1   :  { %3623 = vmatpush3.bf16.msra.mxu0 %v3622_v56 }
 0x5d2   :  { %3624 = vmatprep.subr.bf16.mxu0 %v3851_v59 }
 0x5d3   :  { %3647 = vmatpush3.bf16.msra.mxu1 %v3646_v44 }
 0x5d4   :  { %3289 = vmatprep.subr.bf16.mxu1 %v3775_v4 }
 0x5d5   :  { %3626 = vmatpush3.bf16.msra.mxu0 %v3625_v61 }
 0x5d6   :  { %3627 = vmatprep.subr.bf16.mxu0 %v3851_v59 }
 0x5d9   :  { %3629 = vmatpush3.bf16.msra.mxu0 %v3628_v3 }
 0x5da   :  { %3630 = vmatprep.subr.bf16.mxu0 %v3851_v59 }
 0x5dd   :  { %3632 = vmatpush3.bf16.msra.mxu0 %v3631_v6  ;;  %v3777_v6 = vld [vmem:[%s4874_s4] sm:$0xff]  }
 0x5de   :  { %3633 = vmatprep.subr.bf16.mxu0 %v3851_v59 }
 0x5e1   :  { %3635 = vmatpush3.bf16.msra.mxu0 %v3634_v12  ;;  %v3781_v12 = vld [vmem:[%s4874_s4 + $0x8] sm:$0xff]  }
 0x5e2   :  { %3636 = vmatprep.subr.bf16.mxu0 %v3851_v59 }
 0x5e5   :  { %3638 = vmatpush3.bf16.msra.mxu0 %v3637_v14  ;;  %v3783_v14 = vld [vmem:[%s4874_s4 + $0x50] sm:$0xff]  }
 0x5e6   :  { %3639 = vmatprep.subr.bf16.mxu0 %v3851_v59 }
 0x5e9   :  { %3641 = vmatpush3.bf16.msra.mxu0 %v3640_v18  ;;  %v3786_v18 = vld [vmem:[%s4874_s4 + $0x90] sm:$0xff]  }
 0x5ea   :  { %3311 = vmatprep.subr.bf16.mxu0 %v3776_v5 }
 0x69f   :  { %v3239_v29 = vpop.f32.mrb[16].mxu0 }
 0x6a0   :  { %v3240_v19 = vpop.f32.mrb[17].mxu0 }
 0x6a1   :  { %v3261_v31 = vpop.f32.mrb[16].mxu1  ;;  %v3241_v46 = vadd.f32 %v3240_v19, %v3239_v29  ;;  %v3242_v51 = vpop.f32.mrb[18].mxu0  ;;  %v3787_v29 = vld [vmem:[%s4874_s4 + $0x58] sm:$0xff]  }
 0x6a2   :  { %v3262_v20 = vpop.f32.mrb[17].mxu1  ;;  %v3243_v21 = vpop.f32.mrb[19].mxu0  ;;  %v3788_v19 = vld [vmem:[%s4874_s4 + $0xd8] sm:$0xff]   ;;  %v3791_v51 = vld [vmem:[%s4874_s4 + $0x60] sm:$0xff]  }
 0x6a3   :  { %v3263_v22 = vadd.f32 %v3262_v20, %v3261_v31  ;;  %v3264_v23 = vpop.f32.mrb[18].mxu1  ;;  %v3789_v31 = vld [vmem:[%s4874_s4 + $0x18] sm:$0xff]   ;;  %v3792_v20 = vld [vmem:[%s4874_s4 + $0xe0] sm:$0xff]  }
 0x6a4   :  { %v3265_v24 = vpop.f32.mrb[19].mxu1  ;;  %v3793_v21 = vld [vmem:[%s4874_s4 + $0x20] sm:$0xff]   ;;  %v3795_v23 = vld [vmem:[%s4874_s4 + $0x68] sm:$0xff]  }
 0x6a5   :  { %v4540_v25 = vadd.f32 %v3263_v22, %v3241_v46  ;;  %v3790_v46 = vld [vmem:[%s4874_s4 + $0x98] sm:$0xff]   ;;  %v3794_v22 = vld [vmem:[%s4874_s4 + $0xa0] sm:$0xff]   ;;  %v3796_v24 = vld [vmem:[%s4874_s4 + $0xe8] sm:$0xff]  }
 0x6a7   :  { %v1697_v26 = vrot.slane %v4540_v25, 4  ;;  %v1703_v27 = vmul.f32 %v4540_v25, %v4540_v25 }
 0x6a9   :  { %v1698_v28 = vadd.f32 %v1697_v26, %v4540_v25  ;;  %v1704_v30 = vrot.slane %v1703_v27, 4  ;;  %v3797_v26 = vld [vmem:[%s4874_s4 + $0x28] sm:$0xff]  }
 0x6ab   :  { %v1699_v32 = vrot.slane %v1698_v28, 2  ;;  %v1705_v33 = vadd.f32 %v1704_v30, %v1703_v27  ;;  %v3798_v27 = vld [vmem:[%s4874_s4 + $0xa8] sm:$0xff]   ;;  %v3800_v30 = vld [vmem:[%s4874_s4 + $0xf0] sm:$0xff]  }
 0x6ad   :  { %v1700_v34 = vadd.f32 %v1699_v32, %v1698_v28  ;;  %v1706_v35 = vrot.slane %v1705_v33, 2  ;;  %v3799_v28 = vld [vmem:[%s4874_s4 + $0x70] sm:$0xff]  }
 0x6ae   :  { %v3801_v32 = vld [vmem:[%s4874_s4 + $0x30] sm:$0xff]  }
 0x6af   :  { %v1701_v7 = vrot.slane %v1700_v34, 1  ;;  %v1707_v10 = vadd.f32 %v1706_v35, %v1705_v33  ;;  %v3802_v33 = vld [vmem:[%s4874_s4 + $0xb0] sm:$0xff]   ;;  %v3804_v35 = vld [vmem:[%s4874_s4 + $0xf8] sm:$0xff]  }
 0x6b1   :  { %v1708_v36 = vrot.slane %v1707_v10, 1  ;;  %v1702_v37 = vadd.f32 %v1701_v7, %v1700_v34  ;;  %v3803_v34 = vld [vmem:[%s4874_s4 + $0x78] sm:$0xff]  }
 0x6b2   :  { %v3805_v7 = vld [vmem:[%s4874_s4 + $0x38] sm:$0xff]  }
 0x6b3   :  { %v1709_v38 = vadd.f32 %v1708_v36, %v1707_v10  ;;  %v3806_v10 = vld [vmem:[%s4874_s4 + $0xb8] sm:$0xff]  }
 0x6b5   :  { %v1710_v39 = vsel %vm511_vm1, %v1702_v37, %v1709_v38 }
 0x6b6   :  { %3512 = vmatmul.mubr.f32.vlgmr.msra.gmra.mrb[20].mxu0 %v1710_v39 }
 0x6b7   :  { %3312 = vmatpush3.bf16.msra.mxu0 %v3778_v8 }
 0x6b8   :  { %3313 = vmatprep.subr.bf16.mxu0 %v3780_v11  ;;  %v2313_v11 = vld [vmem:[%s4875_s9 + $0x18] sm:$0xff] }
 0x6bb   :  { %3314 = vmatpush3.bf16.msra.mxu0 %v3782_v13  ;;  %v2314_v13 = vld [vmem:[%s4875_s9 + $0x20] sm:$0xff] }
 0x6bc   :  { %3315 = vmatprep.subr.bf16.mxu0 %v3784_v15 }
 0x6bf   :  { %3316 = vmatpush3.bf16.msra.mxu0 %v3786_v18  ;;  %v2317_v18 = vld [vmem:[%s4875_s9 + $0x38] sm:$0xff] }
 0x6c0   :  { %3317 = vmatprep.subr.bf16.mxu0 %v3788_v19  ;;  %v2318_v19 = vld [vmem:[%s4875_s9 + $0x40] sm:$0xff] }
 0x6c3   :  { %3318 = vmatpush3.bf16.msra.mxu0 %v3790_v46 }
 0x6c4   :  { %3319 = vmatprep.subr.bf16.mxu0 %v3792_v20  ;;  %v2321_v20 = vld [vmem:[%s4875_s9 + $0x58] sm:$0xff] }
 0x6c7   :  { %3320 = vmatpush3.bf16.msra.mxu0 %v3794_v22 }
 0x6c8   :  { %3321 = vmatprep.subr.bf16.mxu0 %v3796_v24 }
 0x6cb   :  { %3322 = vmatpush3.bf16.msra.mxu0 %v3798_v27 }
 0x6cc   :  { %3323 = vmatprep.subr.bf16.mxu0 %v3800_v30 }
 0x6cf   :  { %3324 = vmatpush3.bf16.msra.mxu0 %v3802_v33 }
 0x6d0   :  { %3325 = vmatprep.subr.bf16.mxu0 %v3804_v35 }
 0x6d3   :  { %3326 = vmatpush3.bf16.msra.mxu0 %v3806_v10 }
 0x6d4   :  { %3666 = vmatprep.subr.bf16.mxu0 %v3851_v59 }
 0x789   :  { %v1793_v45 = vpop.f32.mrb[20].mxu0 }
 0x78a   :  { %v1797_v47 = vmul.f32 0.03125, %v1793_v45  ;;  %v3513_v48 = vpop.f32.mrb[21].mxu0 }
 0x78c   :  { %v1798_v49 = vmul.f32 %v1797_v47, %v1797_v47 }
 0x78e   :  { %v1800_v50 = vrot.slane %v1798_v49, 7 }
 0x790   :  { %v1802_v52 = vsub.f32 %v1797_v47, %v1800_v50 }
 0x792   :  { %v1803_v53 = vadd.f32 1e-05, %v1802_v52 }
 0x794   :  { %3846 = vrsqrt.f32 %v1803_v53 }
 0x79e   :  { %v3847_v54 = vpop.eup %3846 }
 0x79f   :  { %v1808_v56 = vrot.slane %v3847_v54, 1 }
 0x7a1   :  { %v1810_v58 = vmul.f32 %v1808_v56, %v1805_v55 }
 0x7a3   :  { %v1811_v61 = vmul.f32 %v1810_v58, %v1797_v47 }
 0x7a5   :  { %v1812_v1 = vsub.f32 %v1806_v60, %v1811_v61  ;;  %v2311_v60 = vld [vmem:[%s4875_s9 + $0x8] sm:$0xff] }
 0x7a7   :  { %v1814_v2 = vrot.slane %v1812_v1, 7 }
 0x7a9   :  { %v1816_v3 = vsel %vm511_vm1, %v1810_v58, %v1814_v2  ;;  %v2310_v58 = vld [vmem:[%s4875_s9] sm:$0xff] }
 0x7aa   :  { %3523 = vmatmul.mubr.msk.f32.vlgmr.msra.gmra.mrb[20].mxu1 %vm1821_vm10, %v1816_v3  ;;  %v3649_v3 = vpack.c.bf16 %v2311_v60, %v2310_v58 }
 0x7ab   :  { %3290 = vmatpush3.bf16.msra.mxu1 %v3777_v6 }
 0x7ac   :  { %3291 = vmatprep.subr.bf16.mxu1 %v3779_v9  ;;  %v2312_v9 = vld [vmem:[%s4875_s9 + $0x10] sm:$0xff] }
 0x7af   :  { %3292 = vmatpush3.bf16.msra.mxu1 %v3781_v12  ;;  %v3652_v12 = vpack.c.bf16 %v2313_v11, %v2312_v9  ;;  %v2404_v11 = vld [vmem:[%s4868_s14 + $0x7] sm:$0x1] }
 0x7b0   :  { %3293 = vmatprep.subr.bf16.mxu1 %v3783_v14  ;;  %v2315_v14 = vld [vmem:[%s4875_s9 + $0x28] sm:$0xff] }
 0x7b1   :  { %v3655_v15 = vpack.c.bf16 %v2315_v14, %v2314_v13 }
 0x7b3   :  { %3294 = vmatpush3.bf16.msra.mxu1 %v3785_v17  ;;  %v2316_v17 = vld [vmem:[%s4875_s9 + $0x30] sm:$0xff] }
 0x7b4   :  { %3295 = vmatprep.subr.bf16.mxu1 %v3787_v29  ;;  %v3658_v29 = vpack.c.bf16 %v2317_v18, %v2316_v17  ;;  %v3809_v17 = vld [vmem:[%s4877_s5 + $0x40] sm:$0xff]  }
 0x7b5   :  { %v3810_v18 = vld [vmem:[%s4877_s5] sm:$0xff]  }
 0x7b7   :  { %3296 = vmatpush3.bf16.msra.mxu1 %v3789_v31  ;;  %v2319_v31 = vld [vmem:[%s4875_s9 + $0x48] sm:$0xff] }
 0x7b8   :  { %3297 = vmatprep.subr.bf16.mxu1 %v3791_v51  ;;  %v3661_v46 = vpack.c.bf16 %v2319_v31, %v2318_v19  ;;  %v2320_v51 = vld [vmem:[%s4875_s9 + $0x50] sm:$0xff]  ;;  %v3812_v19 = vld [vmem:[%s4877_s5 + $0x80] sm:$0xff]   ;;  %v3813_v31 = vld [vmem:[%s4877_s5 + $0x48] sm:$0xff]  }
 0x7bb   :  { %3298 = vmatpush3.bf16.msra.mxu1 %v3793_v21  ;;  %v3664_v21 = vpack.c.bf16 %v2321_v20, %v2320_v51  ;;  %v3815_v51 = vld [vmem:[%s4877_s5 + $0xc8] sm:$0xff]   ;;  %v2512_v20 = vld [vmem:[#allocation5] sm:$0x1] }
 0x7bc   :  { %3299 = vmatprep.subr.bf16.mxu1 %v3795_v23  ;;  %2514 = vst.msk [vmem:[#allocation10] sm:$0x1] %vm2513_vm15, %v2512_v20 }
 0x7bf   :  { %3300 = vmatpush3.bf16.msra.mxu1 %v3797_v26 }
 0x7c0   :  { %3301 = vmatprep.subr.bf16.mxu1 %v3799_v28 }
 0x7c3   :  { %3302 = vmatpush3.bf16.msra.mxu1 %v3801_v32 }
 0x7c4   :  { %3303 = vmatprep.subr.bf16.mxu1 %v3803_v34 }
 0x7c7   :  { %3304 = vmatpush3.bf16.msra.mxu1 %v3805_v7 }
 0x7c8   :  { %3648 = vmatprep.subr.bf16.mxu1 %v3851_v59 }
 0x87d   :  { %v1891_v36 = vpop.f32.mrb[20].mxu1 }
 0x87e   :  { %v1898_v37 = vrot.slane %v1891_v36, %v4283_v63  ;;  %v3524_v38 = vpop.f32.mrb[21].mxu1  ;;  %v1903_v40 = vrot.slane %v1891_v36, %v4286_v0 }
 0x880   :  { %v1899_v39 = vmul.f32 %v1898_v37, %v4540_v25 }
 0x882   :  { %v1904_v41 = vadd.f32 %v1903_v40, %v1899_v39 }
 0x884   :  { %vm1905_vm11 = vcmp.ge.f32.partialorder %v1904_v41, 0.0  ;;  %v1906_v16 = vmul.f32 0.2, %v1904_v41 }
 0x886   :  { %v1907_v42 = vsel %vm1905_vm11, %v1904_v41, %v1906_v16 }
 0x887   :  { %1908 = vst [vmem:[#allocation4 + $0x1] ss:$6 sps:$4 sm:$0xff] %v1907_v42  }
 0x88e   :  { %v1910_v43 = vld [vmem:[#allocation4] ss:$2 sm:$0x3]  ;;  %v1913_v44 = vld [vmem:[#allocation4 + $0x1] ss:$2 sm:$0x3] }
 0x88f   :  { %1911 = vst [vmem:[#allocation9] sm:$0x3] %v1910_v43  ;;  %1914 = vst [vmem:[#allocation9 + $0x4] sm:$0x3] %v1913_v44 }
 0x890   :  { %v1922_v45 = vld [vmem:[#allocation4 + $0x6] ss:$2 sm:$0x3]  ;;  %v1928_v47 = vld [vmem:[#allocation4 + $0x7] ss:$2 sm:$0x3] }
 0x891   :  { %v1924_v48 = vrot.slane %v1922_v45, 6  ;;  %v1930_v49 = vrot.slane %v1928_v47, 6  ;;  %v1916_v50 = vld [vmem:[#allocation4 + $0x2] ss:$2 sm:$0x3] }
 0x892   :  { %1917 = vst [vmem:[#allocation9 + $0x8] sm:$0x3] %v1916_v50  ;;  %v1919_v52 = vld [vmem:[#allocation4 + $0x3] ss:$2 sm:$0x3]  ;;  %v2416_v50 = vld [vmem:[%s4876_s13 + $0x8] sm:$0xff] }
 0x893   :  { %v1934_v53 = vld [vmem:[#allocation4 + $0x8] ss:$2 sm:$0x3]  ;;  %1926 = vst [vmem:[#allocation9] sm:$0xc] %v1924_v48 }
 0x894   :  { %1932 = vst [vmem:[#allocation9 + $0x4] sm:$0xc] %v1930_v49  ;;  %1920 = vst [vmem:[#allocation9 + $0xc] sm:$0x3] %v1919_v52  ;;  %v1936_v25 = vrot.slane %v1934_v53, 6  ;;  %v2415_v49 = vld [vmem:[%s4876_s13] sm:$0xff] }
 0x895   :  { %v1940_v54 = vld [vmem:[#allocation4 + $0x9] ss:$2 sm:$0x3]  ;;  %v3667_v52 = vpack.c.bf16 %v2416_v50, %v2415_v49  ;;  %v2417_v53 = vld [vmem:[%s4876_s13 + $0x10] sm:$0xff]  ;;  %v3840_v49 = vld [vmem:[%s4877_s5 + $0xb8] sm:$0xff]  }
 0x896   :  { %v1942_v55 = vrot.slane %v1940_v54, 6  ;;  %1938 = vst [vmem:[#allocation9 + $0x8] sm:$0xc] %v1936_v25  ;;  %v2418_v25 = vld [vmem:[%s4876_s13 + $0x18] sm:$0xff] }
 0x897   :  { %v3670_v54 = vpack.c.bf16 %v2418_v25, %v2417_v53 }
 0x898   :  { %1944 = vst [vmem:[#allocation9 + $0xc] sm:$0xc] %v1942_v55  ;;  %v2419_v55 = vld [vmem:[%s4876_s13 + $0x20] sm:$0xff] }
 0x89b   :  { %v1945_v56 = vld [vmem:[#allocation9] sm:$0xff] }
 0x89c   :  { %v1949_v61 = vcombine.high %v1945_v56, %v1945_v56  ;;  %v1953_v4 = vpack.c.bf16 %v1945_v56, %v1945_v56  ;;  %v2420_v56 = vld [vmem:[%s4876_s13 + $0x28] sm:$0xff] }
 0x89d   :  { %v3673_v58 = vpack.c.bf16 %v2420_v56, %v2419_v55 }
 0x89e   :  { %v1954_v1 = vpack.c.bf16 %v1949_v61, %v1949_v61 }
 0x89f   :  { %v1946_v2 = vld [vmem:[#allocation9 + $0x8] sm:$0xff] }
 0x8a0   :  { %v1950_v5 = vcombine.high %v1946_v2, %v1946_v2  ;;  %2245 = vmatprep.mubr.bf16.mxu1 %v1954_v1  ;;  %v1955_v8 = vpack.c.bf16 %v1946_v2, %v1946_v2 }
 0x8a1   :  { %2246 = vmatmul.mubr.bf16.vlgmr.msra.gmra.mrb[24].mxu1 %v1953_v4 }
 0x8a2   :  { %v1956_v6 = vpack.c.bf16 %v1950_v5, %v1950_v5  ;;  %3650 = vmatpush3.bf16.msra.mxu1 %v3649_v3  ;;  %3549 = vmatprep.mubr.msk.f32.mxu1 %vm3852_vm0, %v4491_v57 }
 0x8a3   :  { %3651 = vmatprep.subr.bf16.mxu1 %v3851_v59 }
 0x8a4   :  { %2285 = vmatprep.mubr.bf16.mxu0 %v1956_v6 }
 0x8a5   :  { %2286 = vmatmul.mubr.bf16.vlgmr.msra.gmra.mrb[24].mxu0 %v1955_v8 }
 0x8a6   :  { %3564 = vmatprep.mubr.msk.f32.mxu0 %vm3852_vm0, %v4491_v57  ;;  %3653 = vmatpush3.bf16.msra.mxu1 %v3652_v12 }
 0x8a7   :  { %3654 = vmatprep.subr.bf16.mxu1 %v3851_v59  ;;  %3668 = vmatpush3.bf16.msra.mxu0 %v3667_v52 }
 0x8a8   :  { %3669 = vmatprep.subr.bf16.mxu0 %v3851_v59 }
 0x8aa   :  { %3656 = vmatpush3.bf16.msra.mxu1 %v3655_v15 }
 0x8ab   :  { %3657 = vmatprep.subr.bf16.mxu1 %v3851_v59  ;;  %3671 = vmatpush3.bf16.msra.mxu0 %v3670_v54 }
 0x8ac   :  { %3672 = vmatprep.subr.bf16.mxu0 %v3851_v59 }
 0x8ae   :  { %3659 = vmatpush3.bf16.msra.mxu1 %v3658_v29  ;;  %v3811_v29 = vld [vmem:[%s4877_s5 + $0xc0] sm:$0xff]  }
 0x8af   :  { %3660 = vmatprep.subr.bf16.mxu1 %v3851_v59  ;;  %3674 = vmatpush3.bf16.msra.mxu0 %v3673_v58 }
 0x8b0   :  { %3375 = vmatprep.subr.bf16.mxu0 %v3811_v29 }
 0x8b2   :  { %3662 = vmatpush3.bf16.msra.mxu1 %v3661_v46  ;;  %v3814_v46 = vld [vmem:[%s4877_s5 + $0x8] sm:$0xff]  }
 0x8b3   :  { %3663 = vmatprep.subr.bf16.mxu1 %v3851_v59  ;;  %v2403_v59 = vld [vmem:[%s4868_s14 + $0x3] sm:$0x1] }
 0x8b6   :  { %3665 = vmatpush3.bf16.msra.mxu1 %v3664_v21  ;;  %v2519_v21 = vld [vmem:[#allocation5 + $0x3] sm:$0x1] }
 0x8b7   :  { %3353 = vmatprep.subr.bf16.mxu1 %v3809_v17  ;;  %2520 = vst.msk [vmem:[#allocation10 + $0x6] sm:$0x1] %vm2513_vm15, %v2519_v21  ;;  %v3051_v17 = vld [vmem:[%s4868_s14 + $0x8] ss:$0 sm:$0xff] }
 0x974   :  { %v3305_v22 = vpop.f32.mrb[24].mxu1 }
 0x975   :  { %v3306_v23 = vpop.f32.mrb[25].mxu1 }
 0x976   :  { %v3307_v24 = vadd.f32 %v3306_v23, %v3305_v22  ;;  %v3308_v26 = vpop.f32.mrb[26].mxu1  ;;  %v2521_v22 = vld [vmem:[#allocation5 + $0x4] sm:$0x1]  ;;  %v2527_v23 = vld [vmem:[#allocation5 + $0x7] sm:$0x1] }
 0x977   :  { %v3309_v28 = vpop.f32.mrb[27].mxu1  ;;  %v3817_v26 = vld [vmem:[%s4877_s5 + $0x50] sm:$0xff]   ;;  %2522 = vst.msk [vmem:[#allocation10 + $0x1] sm:$0x1] %vm2513_vm15, %v2521_v22  ;;  %2528 = vst.msk [vmem:[#allocation10 + $0x7] sm:$0x1] %vm2513_vm15, %v2527_v23 }
 0x978   :  { %v3327_v27 = vpop.f32.mrb[24].mxu0  ;;  %v3819_v28 = vld [vmem:[%s4877_s5 + $0xd0] sm:$0xff]  }
 0x979   :  { %v3328_v30 = vpop.f32.mrb[25].mxu0 }
 0x97a   :  { %v3329_v32 = vadd.f32 %v3328_v30, %v3327_v27  ;;  %v3330_v33 = vpop.f32.mrb[26].mxu0  ;;  %v3818_v27 = vld [vmem:[%s4877_s5 + $0x10] sm:$0xff]  }
 0x97b   :  { %v3331_v34 = vpop.f32.mrb[27].mxu0  ;;  %v3820_v30 = vld [vmem:[%s4877_s5 + $0x90] sm:$0xff]   ;;  %v3822_v33 = vld [vmem:[%s4877_s5 + $0x18] sm:$0xff]  }
 0x97c   :  { %v4715_v35 = vadd.f32 %v3329_v32, %v3307_v24  ;;  %v3816_v24 = vld [vmem:[%s4877_s5 + $0x88] sm:$0xff]   ;;  %v3821_v32 = vld [vmem:[%s4877_s5 + $0x58] sm:$0xff]  }
 0x97d   :  { %v3823_v34 = vld [vmem:[%s4877_s5 + $0xd8] sm:$0xff]  }
 0x97e   :  { %v2294_v7 = vsel %vm2293_vm13, %v4715_v35, 0.0  ;;  %v2301_v10 = vmul.f32 %v4715_v35, %v4715_v35 }
 0x97f   :  { %v2295_v57 = vrot.slane %v2294_v7, 4 }
 0x980   :  { %v2302_v36 = vsel %vm2293_vm13, %v2301_v10, 0.0  ;;  %v3825_v10 = vld [vmem:[%s4877_s5 + $0x60] sm:$0xff]  }
 0x981   :  { %v2296_v37 = vadd.f32 %v2295_v57, %v2294_v7  ;;  %v2303_v38 = vrot.slane %v2302_v36, 4  ;;  %v3824_v7 = vld [vmem:[%s4877_s5 + $0x98] sm:$0xff]   ;;  %v3826_v57 = vld [vmem:[%s4877_s5 + $0x20] sm:$0xff]  }
 0x983   :  { %v2297_v39 = vrot.slane %v2296_v37, 2  ;;  %v2304_v40 = vadd.f32 %v2303_v38, %v2302_v36  ;;  %v3827_v36 = vld [vmem:[%s4877_s5 + $0xe0] sm:$0xff]   ;;  %v3829_v38 = vld [vmem:[%s4877_s5 + $0x68] sm:$0xff]  }
 0x985   :  { %v2298_v41 = vadd.f32 %v2297_v39, %v2296_v37  ;;  %v2305_v16 = vrot.slane %v2304_v40, 2  ;;  %v3828_v37 = vld [vmem:[%s4877_s5 + $0xa0] sm:$0xff]   ;;  %v3830_v39 = vld [vmem:[%s4877_s5 + $0x28] sm:$0xff]  }
 0x987   :  { %v2299_v42 = vrot.slane %v2298_v41, 1  ;;  %v2306_v43 = vadd.f32 %v2305_v16, %v2304_v40  ;;  %v3831_v40 = vld [vmem:[%s4877_s5 + $0xe8] sm:$0xff]   ;;  %v3833_v16 = vld [vmem:[%s4877_s5 + $0x70] sm:$0xff]  }
 0x989   :  { %v2307_v44 = vrot.slane %v2306_v43, 1  ;;  %v2300_v45 = vadd.f32 %v2299_v42, %v2298_v41  ;;  %v3832_v41 = vld [vmem:[%s4877_s5 + $0xa8] sm:$0xff]   ;;  %v3834_v42 = vld [vmem:[%s4877_s5 + $0x30] sm:$0xff]  }
 0x98b   :  { %v2308_v47 = vadd.f32 %v2307_v44, %v2306_v43  ;;  %v3835_v43 = vld [vmem:[%s4877_s5 + $0xf0] sm:$0xff]  }
 0x98c   :  { %v3836_v44 = vld [vmem:[%s4877_s5 + $0xb0] sm:$0xff]  }
 0x98d   :  { %v2309_v48 = vsel %vm511_vm1, %v2300_v45, %v2308_v47  ;;  %v3837_v45 = vld [vmem:[%s4877_s5 + $0x78] sm:$0xff]  }
 0x98e   :  { %3550 = vmatmul.mubr.msk.f32.vlgmr.msra.gmra.mrb[22].mxu1 %vm61_vm12, %v2309_v48  ;;  %v3838_v47 = vld [vmem:[%s4877_s5 + $0x38] sm:$0xff]  }
 0x98f   :  { %3354 = vmatpush3.bf16.msra.mxu1 %v3810_v18  ;;  %v3839_v48 = vld [vmem:[%s4877_s5 + $0xf8] sm:$0xff]  }
 0x990   :  { %3355 = vmatprep.subr.bf16.mxu1 %v3813_v31 }
 0x993   :  { %3356 = vmatpush3.bf16.msra.mxu1 %v3814_v46 }
 0x994   :  { %3357 = vmatprep.subr.bf16.mxu1 %v3817_v26 }
 0x997   :  { %3358 = vmatpush3.bf16.msra.mxu1 %v3818_v27 }
 0x998   :  { %3359 = vmatprep.subr.bf16.mxu1 %v3821_v32 }
 0x99b   :  { %3360 = vmatpush3.bf16.msra.mxu1 %v3822_v33 }
 0x99c   :  { %3361 = vmatprep.subr.bf16.mxu1 %v3825_v10 }
 0x99f   :  { %3362 = vmatpush3.bf16.msra.mxu1 %v3826_v57 }
 0x9a0   :  { %3363 = vmatprep.subr.bf16.mxu1 %v3829_v38 }
 0x9a3   :  { %3364 = vmatpush3.bf16.msra.mxu1 %v3830_v39 }
 0x9a4   :  { %3365 = vmatprep.subr.bf16.mxu1 %v3833_v16 }
 0x9a7   :  { %3366 = vmatpush3.bf16.msra.mxu1 %v3834_v42 }
 0x9a8   :  { %3367 = vmatprep.subr.bf16.mxu1 %v3837_v45 }
 0x9ab   :  { %3368 = vmatpush3.bf16.msra.mxu1 %v3838_v47 }
 0xa61   :  { %v2391_v60 = vpop.f32.mrb[22].mxu1 }
 0xa62   :  { %v2395_v61 = vmul.f32 0.125, %v2391_v60  ;;  %v3551_v1 = vpop.f32.mrb[23].mxu1  ;;  %v3854_v60 = vmov 1983009808  }
 0xa64   :  { %v2396_v2 = vmul.f32 %v2395_v61, %v2395_v61 }
 0xa66   :  { %v2398_v3 = vrot.slane %v2396_v2, 7 }
 0xa68   :  { %v2400_v4 = vsub.f32 %v2395_v61, %v2398_v3 }
 0xa6a   :  { %v2401_v5 = vadd.f32 1e-05, %v2400_v4 }
 0xa6c   :  { %3848 = vrsqrt.f32 %v2401_v5 }
 0xa76   :  { %v3849_v6 = vpop.eup %3848 }
 0xa77   :  { %v2406_v8 = vrot.slane %v3849_v6, 1 }
 0xa79   :  { %v2408_v9 = vmul.f32 %v2406_v8, %v2403_v59 }
 0xa7b   :  { %v2409_v12 = vmul.f32 %v2408_v9, %v2395_v61  ;;  %v2533_v61 = vunpack.c.l.s4 %v3854_v60 }
 0xa7d   :  { %v2410_v13 = vsub.f32 %v2404_v11, %v2409_v12 }
 0xa7f   :  { %v2412_v14 = vrot.slane %v2410_v13, 7 }
 0xa81   :  { %v2414_v15 = vsel %vm511_vm1, %v2408_v9, %v2412_v14  ;;  %vm2508_vm1 = vcmask 779264  }
 0xa82   :  { %3565 = vmatmul.mubr.msk.f32.vlgmr.msra.gmra.mrb[22].mxu0 %vm2421_vm14, %v2414_v15 }
 0xa83   :  { %3376 = vmatpush3.bf16.msra.mxu0 %v3812_v19 }
 0xa84   :  { %3377 = vmatprep.subr.bf16.mxu0 %v3815_v51 }
 0xa87   :  { %3378 = vmatpush3.bf16.msra.mxu0 %v3816_v24 }
 0xa88   :  { %3379 = vmatprep.subr.bf16.mxu0 %v3819_v28 }
 0xa8b   :  { %3380 = vmatpush3.bf16.msra.mxu0 %v3820_v30 }
 0xa8c   :  { %3381 = vmatprep.subr.bf16.mxu0 %v3823_v34 }
 0xa8f   :  { %3382 = vmatpush3.bf16.msra.mxu0 %v3824_v7 }
 0xa90   :  { %3383 = vmatprep.subr.bf16.mxu0 %v3827_v36 }
 0xa93   :  { %3384 = vmatpush3.bf16.msra.mxu0 %v3828_v37 }
 0xa94   :  { %3385 = vmatprep.subr.bf16.mxu0 %v3831_v40 }
 0xa97   :  { %3386 = vmatpush3.bf16.msra.mxu0 %v3832_v41 }
 0xa98   :  { %3387 = vmatprep.subr.bf16.mxu0 %v3835_v43 }
 0xa9b   :  { %3388 = vmatpush3.bf16.msra.mxu0 %v3836_v44 }
 0xa9c   :  { %3389 = vmatprep.subr.bf16.mxu0 %v3839_v48 }
 0xa9f   :  { %3390 = vmatpush3.bf16.msra.mxu0 %v3840_v49 }
 0xb55   :  { %v2491_v50 = vpop.f32.mrb[22].mxu0 }
 0xb56   :  { %v2498_v52 = vrot.slane %v2491_v50, %v4283_v63  ;;  %v3566_v53 = vpop.f32.mrb[23].mxu0  ;;  %v2503_v54 = vrot.slane %v2491_v50, %v4286_v0  ;;  %v2534_v0 = vunpack.c.0.s8 %v2533_v61 }
 0xb58   :  { %v2499_v25 = vmul.f32 %v2498_v52, %v4715_v35  ;;  %v2537_v35 = vsub.s32 %v2534_v0, %v4280_v62 }
 0xb5a   :  { %v2504_v55 = vadd.f32 %v2503_v54, %v2499_v25 }
 0xb5c   :  { %vm2505_vm0 = vcmp.ge.f32.partialorder %v2504_v55, 0.0  ;;  %v2506_v56 = vmul.f32 0.2, %v2504_v55 }
 0xb5e   :  { %v2507_v58 = vsel %vm2505_vm0, %v2504_v55, %v2506_v56 }
 0xb5f   :  { %2509 = vst.msk [vmem:[#allocation5 + $0x1] sm:$0x3] %vm2508_vm1, %v2507_v58 }
 0xb60   :  { %2511 = vst.msk [vmem:[#allocation5 + $0x3] sm:$0xc] %vm2510_vm2, %v2507_v58 }
 0xb66   :  { %v2515_v1 = vld [vmem:[#allocation5 + $0x1] sm:$0x1]  ;;  %v2517_v2 = vld [vmem:[#allocation5 + $0x2] sm:$0x1] }
 0xb67   :  { %v2523_v3 = vld [vmem:[#allocation5 + $0x5] sm:$0x1]  ;;  %2516 = vst.msk [vmem:[#allocation10 + $0x2] sm:$0x1] %vm2513_vm15, %v2515_v1  ;;  %2518 = vst.msk [vmem:[#allocation10 + $0x4] sm:$0x1] %vm2513_vm15, %v2517_v2 }
 0xb68   :  { %2524 = vst.msk [vmem:[#allocation10 + $0x3] sm:$0x1] %vm2513_vm15, %v2523_v3  ;;  %v2525_v63 = vld [vmem:[#allocation5 + $0x6] sm:$0x1] }
 0xb69   :  { %2526 = vst.msk [vmem:[#allocation10 + $0x5] sm:$0x1] %vm2513_vm15, %v2525_v63 }
 0xb70   :  { %v2529_v4 = vld [vmem:[#allocation10] sm:$0xff] }
 0xb71   :  { %v2538_v5 = vrot.slane %v2529_v4, %v2537_v35  ;;  %v2531_v6 = vcombine.high %v2529_v4, %v2529_v4 }
 0xb73   :  { %v2546_v59 = vcombine.high %v2538_v5, %v2538_v5  ;;  %v2545_v8 = vrot.slane %v2531_v6, %v2537_v35  ;;  %v2552_v12 = vpack.c.bf16 %v2538_v5, %v2538_v5 }
 0xb75   :  { %v2553_v9 = vpack.c.bf16 %v2546_v59, %v2546_v59  ;;  %v2547_v11 = vcombine.high %v2545_v8, %v2545_v8  ;;  %v2554_v14 = vpack.c.bf16 %v2545_v8, %v2545_v8 }
 0xb77   :  { %2849 = vmatprep.mubr.bf16.mxu1 %v2553_v9  ;;  %v2555_v13 = vpack.c.bf16 %v2547_v11, %v2547_v11 }
 0xb78   :  { %2850 = vmatmul.mubr.bf16.vlgmr.msra.gmra.mrb[28].mxu1 %v2552_v12 }
 0xb79   :  { %2889 = vmatprep.mubr.bf16.mxu0 %v2555_v13 }
 0xb7a   :  { %2890 = vmatmul.mubr.bf16.vlgmr.msra.gmra.mrb[28].mxu0 %v2554_v14 }
 0xc4b   :  { %v3369_v15 = vpop.f32.mrb[28].mxu1 }
 0xc4c   :  { %v3370_v62 = vpop.f32.mrb[29].mxu1 }
 0xc4d   :  { %v3371_v18 = vadd.f32 %v3370_v62, %v3369_v15  ;;  %v3372_v29 = vpop.f32.mrb[30].mxu1  ;;  %v3391_v19 = vpop.f32.mrb[28].mxu0 }
 0xc4e   :  { %v3373_v31 = vpop.f32.mrb[31].mxu1  ;;  %v3392_v46 = vpop.f32.mrb[29].mxu0 }
 0xc4f   :  { %v2852_v51 = vadd.f32 %v3371_v18, %v3051_v17  ;;  %v3393_v20 = vadd.f32 %v3392_v46, %v3391_v19  ;;  %v3394_v21 = vpop.f32.mrb[30].mxu0 }
 0xc50   :  { %v3395_v22 = vpop.f32.mrb[31].mxu0 }
 0xc51   :  { %v2892_v23 = vadd.f32 %v3393_v20, %v2852_v51 }
 0xc53   :  { %2898 = vst.msk [vmem:[%s4878_s15] sm:$0x3] %vm2897_vm3, %v2892_v23 }

</bundles_post_ra>
